<compile_context>
chip_gen: v7x
topology: tpu7x:2x2x1
jax: 0.10.0
libtpu: 0.0.40
codegen_flags: <defaults>
</compile_context>

<pallas_src>
import jax
import jax.numpy as jnp
from jax import lax
from jax.experimental import pallas as pl
from jax.experimental.pallas import tpu as pltpu


# ----------------------------------------------------------------------------------
# Kernel 1: 3x3 conv as a single im2col matmul (K = 9*Cin) + per-block BN statistics
# ----------------------------------------------------------------------------------
def _conv_stats_kernel(x_ref, w_ref, out_ref, stats_ref):
    # x_ref:     (1, H+2, W+2, Cin)  bf16 zero-padded NHWC image (whole image; block index is
    #                                constant over the row-tile axis -> DMA'd once per batch).
    # w_ref:     (9*Cin, COUT_PAD)   bf16 taps flattened (ky, kx, ci) along K; Cout zero-padded.
    # out_ref:   (1, TH*W, COUT_PAD) bf16 conv output rows for this row tile (lane-dense).
    # stats_ref: (1, 1, 2, COUT_PAD) f32 [per-block sum, per-block centered sum-of-squares].
    _, hp2, wp2, cin = x_ref.shape
    w_out = wp2 - 2
    th = out_ref.shape[1] // w_out

    row0 = pl.program_id(1) * th
    if th % 8 == 0:
        row0 = pl.multiple_of(row0, 8)
    xs = x_ref[0, pl.ds(row0, th + 2), :, :]                   # (TH+2, W+2, Cin) bf16

    # im2col: one (TH*W, 9*Cin) patch so the MXU sees a single matmul with K = 9*Cin
    # instead of 9 skinny K = Cin pushes.
    cols = [xs[ky:ky + th, kx:kx + w_out, :].reshape(th * w_out, cin)
            for ky in range(3) for kx in range(3)]
    patch = jnp.concatenate(cols, axis=-1)                     # (TH*W, 9*Cin) bf16

    acc = jnp.dot(patch, w_ref[...],
                  preferred_element_type=jnp.float32)          # (TH*W, COUT_PAD) f32
    out_ref[0] = acc.astype(out_ref.dtype)

    # Per-block BN statistics in f32: block sum + centered M2 (avoids E[x^2]-E[x]^2 cancellation).
    inv_n = 1.0 / float(th * w_out)
    s = jnp.sum(acc, axis=0, keepdims=True)                    # (1, COUT_PAD)
    d = acc - s * inv_n
    m2 = jnp.sum(d * d, axis=0, keepdims=True)                 # (1, COUT_PAD)
    stats_ref[0, 0] = jnp.concatenate([s, m2], axis=0)         # (2, COUT_PAD)


# ----------------------------------------------------------------------------------
# Kernel 2: fused BatchNorm affine (scale/shift) + ReLU on lane-dense row tiles
# ----------------------------------------------------------------------------------
def _bn_relu_kernel(y_ref, sc_ref, sh_ref, o_ref):
    # y_ref: (TR, COUT_PAD) bf16; sc/sh: (1, COUT_PAD) f32; o_ref: (TR, COUT_PAD) f32.
    y = y_ref[...].astype(jnp.float32)        # upcast: elementwise math stays f32 (v5e-safe)
    o_ref[...] = jnp.maximum(y * sc_ref[...] + sh_ref[...], 0.0)


# ----------------------------------------------------------------------------------
# Tile-size helpers
# ----------------------------------------------------------------------------------
def _pick_conv_row_tile(h, w, cout_pad, acc_budget_bytes=2 << 20):
    """Rows per conv block: prefer >=2 row tiles (pipeline depth / megacore), keep the f32
    accumulator block under the budget, keep the (TH*W, COUT_PAD) block (8,128)-legal."""
    th = h // 2 if h % 2 == 0 else h
    while th % 2 == 0 and th * w * cout_pad * 4 > acc_budget_bytes:
        th //= 2
    if th != h and (th * w) % 8 != 0:
        th = h            # full-spatial block: block dim == array dim, exempt from (8,128)
    return th


def _pick_bn_row_tile(rows, cout_pad, out_budget_bytes=4 << 20):
    """Largest multiple-of-8 divisor of `rows` under a MiB-scale budget (>=2 grid steps when
    possible)."""
    budget_rows = max(8, out_budget_bytes // (cout_pad * 4))
    cap = min(budget_rows, rows // 2 if rows >= 16 else rows)
    t = min(rows, cap)
    t -= t % 8
    while t >= 8:
        if rows % t == 0:
            return t
        t -= 8
    # TODO(synk): rows not divisible by 8 -> use a pl.cdiv grid with a masked tail block.
    return rows


# ----------------------------------------------------------------------------------
# Wrapper: ConvBnReLU forward (NCHW in, NCHW out — PyTorch layout)
# ----------------------------------------------------------------------------------
def conv_bn_relu(x, weight, gamma, beta, eps=1e-5):
    B, Cin, H, W = x.shape
    Cout = weight.shape[0]
    COUT_PAD = ((Cout + 127) // 128) * 128

    # Input: NCHW -> NHWC + 1-px zero pad (one fused XLA pass), bf16 matmul operand.
    x_nhwc = jnp.transpose(x, (0, 2, 3, 1))
    x_pad = jnp.pad(x_nhwc, ((0, 0), (1, 1), (1, 1), (0, 0))).astype(jnp.bfloat16)

    # Weights: (Cout, Cin, 3, 3) -> (ky, kx, Cin, Cout) -> (9*Cin, Cout) -> pad N to COUT_PAD.
    w9 = jnp.transpose(weight, (2, 3, 1, 0)).reshape(9 * Cin, Cout)
    w9 = jnp.pad(w9, ((0, 0), (0, COUT_PAD - Cout))).astype(jnp.bfloat16)

    TH = _pick_conv_row_tile(H, W, COUT_PAD)
    R = H // TH

    conv, stats = pl.pallas_call(
        _conv_stats_kernel,
        out_shape=(jax.ShapeDtypeStruct((B, H * W, COUT_PAD), jnp.bfloat16),
                   jax.ShapeDtypeStruct((B, R, 2, COUT_PAD), jnp.float32)),
        grid=(B, R),
        in_specs=[pl.BlockSpec((1, H + 2, W + 2, Cin), lambda b, r: (b, 0, 0, 0)),
                  pl.BlockSpec((9 * Cin, COUT_PAD), lambda b, r: (0, 0))],
        out_specs=(pl.BlockSpec((1, TH * W, COUT_PAD), lambda b, r: (b, r, 0)),
                   pl.BlockSpec((1, 1, 2, COUT_PAD), lambda b, r: (b, r, 0, 0))),
        compiler_params=pltpu.CompilerParams(
            dimension_semantics=("parallel", "parallel")),
    )(x_pad, w9)

    # Finish BN batch statistics: Chan-et-al. combine of per-block (sum, centered M2).
    # Tiny (B, R, COUT_PAD) f32 reduction done in plain JAX so both grid axes stay "parallel".
    n_blk = float(TH * W)
    n_total = float(B * H * W)
    sums = stats[:, :, 0, :]
    m2s = stats[:, :, 1, :]
    mean = jnp.sum(sums, axis=(0, 1)) / n_total
    mean_blk = sums / n_blk
    m2 = jnp.sum(m2s, axis=(0, 1)) + n_blk * jnp.sum((mean_blk - mean) ** 2, axis=(0, 1))
    var = jnp.maximum(m2 / n_total, 0.0)                 # biased variance (BN normalization)

    gamma_p = jnp.pad(gamma.astype(jnp.float32), (0, COUT_PAD - Cout))
    beta_p = jnp.pad(beta.astype(jnp.float32), (0, COUT_PAD - Cout))
    scale = gamma_p * lax.rsqrt(var + eps)
    shift = beta_p - mean * scale

    # Fused scale/shift + ReLU over lane-dense (rows, COUT_PAD) tiles.
    rows = B * H * W
    y2 = conv.reshape(rows, COUT_PAD)                    # contiguous reshape, no data movement
    TR = _pick_bn_row_tile(rows, COUT_PAD)

    out2 = pl.pallas_call(
        _bn_relu_kernel,
        out_shape=jax.ShapeDtypeStruct((rows, COUT_PAD), jnp.float32),
        grid=(rows // TR,),
        in_specs=[pl.BlockSpec((TR, COUT_PAD), lambda i: (i, 0)),
                  pl.BlockSpec((1, COUT_PAD), lambda i: (0, 0)),
                  pl.BlockSpec((1, COUT_PAD), lambda i: (0, 0))],
        out_specs=pl.BlockSpec((TR, COUT_PAD), lambda i: (i, 0)),
        compiler_params=pltpu.CompilerParams(dimension_semantics=("parallel",)),
    )(y2, scale.reshape(1, COUT_PAD), shift.reshape(1, COUT_PAD))

    # Drop channel padding, NHWC -> NCHW (one fused XLA pass).
    out = out2.reshape(B, H, W, COUT_PAD)[..., :Cout]
    return jnp.transpose(out, (0, 3, 1, 2))


# ----------------------------------------------------------------------------------
# Plain-JAX reference (sanity check only)
# ----------------------------------------------------------------------------------
def _reference(x, weight, gamma, beta, eps=1e-5):
    conv = lax.conv_general_dilated(
        x, weight, window_strides=(1, 1), padding=((1, 1), (1, 1)),
        dimension_numbers=('NCHW', 'OIHW', 'NCHW'))
    mean = jnp.mean(conv, axis=(0, 2, 3), keepdims=True)
    var = jnp.mean((conv - mean) ** 2, axis=(0, 2, 3), keepdims=True)
    y = (conv - mean) * lax.rsqrt(var + eps) * gamma.reshape(1, -1, 1, 1) \
        + beta.reshape(1, -1, 1, 1)
    return jnp.maximum(y, 0.0)


# ----------------------------------------------------------------------------------
# Deterministic demo
# ----------------------------------------------------------------------------------
if __name__ == "__main__":
    key = jax.random.PRNGKey(0)
    B, Cin, Cout, H, W = 2, 16, 32, 16, 16

    k1, k2, k3, k4 = jax.random.split(key, 4)
    x = jax.random.normal(k1, (B, Cin, H, W), dtype=jnp.float32)
    weight = 0.1 * jax.random.normal(k2, (Cout, Cin, 3, 3), dtype=jnp.float32)
    gamma = 1.0 + 0.1 * jax.random.normal(k3, (Cout,), dtype=jnp.float32)
    beta = 0.1 * jax.random.normal(k4, (Cout,), dtype=jnp.float32)

    out = jax.jit(conv_bn_relu)(x, weight, gamma, beta)
    out = jax.block_until_ready(out)

    ref = _reference(x, weight, gamma, beta)
    err = float(jnp.max(jnp.abs(out - ref)))
    assert out.shape == (B, Cout, H, W), out.shape
    assert err < 6e-2, f"max abs error vs f32 reference: {err}"  # bf16 operands + intermediate

    print("KERNEL_OK")
</pallas_src>

<mosaic_0001>
module attributes {stable_mosaic.version = 11 : i64} {
  func.func @_conv_stats_kernel(%arg0: i32, %arg1: i32, %arg2: memref<1x18x18x16xbf16, #tpu.memory_space<vmem>>, %arg3: memref<144x128xbf16, #tpu.memory_space<vmem>>, %arg4: memref<1x128x128xbf16, #tpu.memory_space<vmem>>, %arg5: memref<1x1x2x128xf32, #tpu.memory_space<vmem>>) attributes {dimension_semantics = [#tpu.dimension_semantics<parallel>, #tpu.dimension_semantics<parallel>], iteration_bounds = array<i64: 2, 2>, scalar_prefetch = 0 : i64, scratch_operands = 0 : i64, tpu.core_type = #tpu.core_type<tc>, window_params = [{transform_indices = @transform_0, window_bounds = array<i64: 1, 18, 18, 16>}, {pipeline_mode = #tpu.pipeline_mode<synchronous>, transform_indices = @transform_1, window_bounds = array<i64: 144, 128>}, {transform_indices = @transform_2, window_bounds = array<i64: 1, 128, 128>}, {transform_indices = @transform_3, window_bounds = array<i64: 1, 1, 2, 128>}]} {
    %c8_i32 = arith.constant 8 : i32
    %0 = arith.muli %arg1, %c8_i32 : i32
    %1 = tpu.assume_multiple %0, 8 : i32
    %c0 = arith.constant 0 : index
    %2 = arith.index_cast %1 : i32 to index
    %c0_0 = arith.constant 0 : index
    %c0_1 = arith.constant 0 : index
    %3 = vector.load %arg2[%c0, %2, %c0_0, %c0_1] : memref<1x18x18x16xbf16, #tpu.memory_space<vmem>>, vector<1x10x18x16xbf16>
    %4 = vector.shape_cast %3 : vector<1x10x18x16xbf16> to vector<10x18x16xbf16>
    %5 = vector.extract_strided_slice %4 {offsets = [0, 0, 0], sizes = [8, 16, 16], strides = [1, 1, 1]} : vector<10x18x16xbf16> to vector<8x16x16xbf16>
    %6 = vector.shape_cast %5 : vector<8x16x16xbf16> to vector<128x16xbf16>
    %7 = vector.extract_strided_slice %4 {offsets = [0, 1, 0], sizes = [8, 16, 16], strides = [1, 1, 1]} : vector<10x18x16xbf16> to vector<8x16x16xbf16>
    %8 = vector.shape_cast %7 : vector<8x16x16xbf16> to vector<128x16xbf16>
    %9 = vector.extract_strided_slice %4 {offsets = [0, 2, 0], sizes = [8, 16, 16], strides = [1, 1, 1]} : vector<10x18x16xbf16> to vector<8x16x16xbf16>
    %10 = vector.shape_cast %9 : vector<8x16x16xbf16> to vector<128x16xbf16>
    %11 = vector.extract_strided_slice %4 {offsets = [1, 0, 0], sizes = [8, 16, 16], strides = [1, 1, 1]} : vector<10x18x16xbf16> to vector<8x16x16xbf16>
    %12 = vector.shape_cast %11 : vector<8x16x16xbf16> to vector<128x16xbf16>
    %13 = vector.extract_strided_slice %4 {offsets = [1, 1, 0], sizes = [8, 16, 16], strides = [1, 1, 1]} : vector<10x18x16xbf16> to vector<8x16x16xbf16>
    %14 = vector.shape_cast %13 : vector<8x16x16xbf16> to vector<128x16xbf16>
    %15 = vector.extract_strided_slice %4 {offsets = [1, 2, 0], sizes = [8, 16, 16], strides = [1, 1, 1]} : vector<10x18x16xbf16> to vector<8x16x16xbf16>
    %16 = vector.shape_cast %15 : vector<8x16x16xbf16> to vector<128x16xbf16>
    %17 = vector.extract_strided_slice %4 {offsets = [2, 0, 0], sizes = [8, 16, 16], strides = [1, 1, 1]} : vector<10x18x16xbf16> to vector<8x16x16xbf16>
    %18 = vector.shape_cast %17 : vector<8x16x16xbf16> to vector<128x16xbf16>
    %19 = vector.extract_strided_slice %4 {offsets = [2, 1, 0], sizes = [8, 16, 16], strides = [1, 1, 1]} : vector<10x18x16xbf16> to vector<8x16x16xbf16>
    %20 = vector.shape_cast %19 : vector<8x16x16xbf16> to vector<128x16xbf16>
    %21 = vector.extract_strided_slice %4 {offsets = [2, 2, 0], sizes = [8, 16, 16], strides = [1, 1, 1]} : vector<10x18x16xbf16> to vector<8x16x16xbf16>
    %22 = vector.shape_cast %21 : vector<8x16x16xbf16> to vector<128x16xbf16>
    %23 = tpu.concatenate %6, %8, %10, %12, %14, %16, %18, %20, %22 in 1 : vector<128x16xbf16>, vector<128x16xbf16>, vector<128x16xbf16>, vector<128x16xbf16>, vector<128x16xbf16>, vector<128x16xbf16>, vector<128x16xbf16>, vector<128x16xbf16>, vector<128x16xbf16> -> vector<128x144xbf16>
    %c0_2 = arith.constant 0 : index
    %c0_3 = arith.constant 0 : index
    %24 = vector.load %arg3[%c0_2, %c0_3] : memref<144x128xbf16, #tpu.memory_space<vmem>>, vector<144x128xbf16>
    %cst = arith.constant dense<0.000000e+00> : vector<128x128xf32>
    %25 = tpu.matmul %23, %24, %cst {dimension_numbers = #tpu.dot_dimension_numbers<[1], [0], [0], [1], [0, 0, 1, 1], [], []>} : vector<128x144xbf16>, vector<144x128xbf16>, vector<128x128xf32> -> vector<128x128xf32>
    %26 = arith.truncf %25 : vector<128x128xf32> to vector<128x128xbf16>
    %c0_4 = arith.constant 0 : index
    %c0_5 = arith.constant 0 : index
    %c0_6 = arith.constant 0 : index
    %27 = vector.load %arg4[%c0_4, %c0_5, %c0_6] : memref<1x128x128xbf16, #tpu.memory_space<vmem>>, vector<1x128x128xbf16>
    %28 = vector.shape_cast %27 : vector<1x128x128xbf16> to vector<128x128xbf16>
    %29 = vector.shape_cast %26 : vector<128x128xbf16> to vector<1x128x128xbf16>
    tpu.vector_store %arg4[%c0_4, %c0_5, %c0_6], %29 {strides = array<i32>} : memref<1x128x128xbf16, #tpu.memory_space<vmem>>, vector<1x128x128xbf16>,
    %cst_7 = arith.constant dense<0.000000e+00> : vector<128xf32>
    %30 = vector.multi_reduction <add>, %25, %cst_7 [0] : vector<128x128xf32> to vector<128xf32>
    %31 = vector.shape_cast %30 : vector<128xf32> to vector<1x128xf32>
    %cst_8 = arith.constant 7.812500e-03 : f32
    %32 = vector.broadcast %cst_8 : f32 to vector<1x128xf32>
    %33 = arith.mulf %31, %32 : vector<1x128xf32>
    %34 = vector.broadcast %33 : vector<1x128xf32> to vector<128x128xf32>
    %35 = arith.subf %25, %34 : vector<128x128xf32>
    %36 = arith.mulf %35, %35 : vector<128x128xf32>
    %cst_9 = arith.constant dense<0.000000e+00> : vector<128xf32>
    %37 = vector.multi_reduction <add>, %36, %cst_9 [0] : vector<128x128xf32> to vector<128xf32>
    %38 = vector.shape_cast %37 : vector<128xf32> to vector<1x128xf32>
    %39 = tpu.concatenate %31, %38 in 0 : vector<1x128xf32>, vector<1x128xf32> -> vector<2x128xf32>
    %c0_10 = arith.constant 0 : index
    %c0_11 = arith.constant 0 : index
    %c0_12 = arith.constant 0 : index
    %c0_13 = arith.constant 0 : index
    %40 = vector.load %arg5[%c0_10, %c0_11, %c0_12, %c0_13] : memref<1x1x2x128xf32, #tpu.memory_space<vmem>>, vector<1x1x2x128xf32>
    %41 = vector.shape_cast %40 : vector<1x1x2x128xf32> to vector<2x128xf32>
    %42 = vector.shape_cast %39 : vector<2x128xf32> to vector<1x1x2x128xf32>
    tpu.vector_store %arg5[%c0_10, %c0_11, %c0_12, %c0_13], %42 {strides = array<i32>} : memref<1x1x2x128xf32, #tpu.memory_space<vmem>>, vector<1x1x2x128xf32>,
    return
  }
  func.func @transform_0(%arg0: i32, %arg1: i32) -> (i32, i32, i32, i32) {
    %c0_i32 = arith.constant 0 : i32
    %c0_i32_0 = arith.constant 0 : i32
    %c0_i32_1 = arith.constant 0 : i32
    %c0_i32_2 = arith.constant 0 : i32
    return %arg0, %c0_i32, %c0_i32_0, %c0_i32_1 : i32, i32, i32, i32
  }
  func.func @transform_1(%arg0: i32, %arg1: i32) -> (i32, i32) {
    %c0_i32 = arith.constant 0 : i32
    %c0_i32_0 = arith.constant 0 : i32
    %c0_i32_1 = arith.constant 0 : i32
    return %c0_i32, %c0_i32_0 : i32, i32
  }
  func.func @transform_2(%arg0: i32, %arg1: i32) -> (i32, i32, i32) {
    %c0_i32 = arith.constant 0 : i32
    %c0_i32_0 = arith.constant 0 : i32
    return %arg0, %arg1, %c0_i32 : i32, i32, i32
  }
  func.func @transform_3(%arg0: i32, %arg1: i32) -> (i32, i32, i32, i32) {
    %c0_i32 = arith.constant 0 : i32
    %c0_i32_0 = arith.constant 0 : i32
    %c0_i32_1 = arith.constant 0 : i32
    return %arg0, %arg1, %c0_i32, %c0_i32_0 : i32, i32, i32, i32
  }
}

module attributes {stable_mosaic.version = 11 : i64} {
  func.func @_bn_relu_kernel(%arg0: i32, %arg1: memref<256x128xbf16, #tpu.memory_space<vmem>>, %arg2: memref<1x128xf32, #tpu.memory_space<vmem>>, %arg3: memref<1x128xf32, #tpu.memory_space<vmem>>, %arg4: memref<256x128xf32, #tpu.memory_space<vmem>>) attributes {dimension_semantics = [#tpu.dimension_semantics<parallel>], iteration_bounds = array<i64: 2>, scalar_prefetch = 0 : i64, scratch_operands = 0 : i64, tpu.core_type = #tpu.core_type<tc>, window_params = [{transform_indices = @transform_0, window_bounds = array<i64: 256, 128>}, {pipeline_mode = #tpu.pipeline_mode<synchronous>, transform_indices = @transform_1, window_bounds = array<i64: 1, 128>}, {pipeline_mode = #tpu.pipeline_mode<synchronous>, transform_indices = @transform_2, window_bounds = array<i64: 1, 128>}, {transform_indices = @transform_3, window_bounds = array<i64: 256, 128>}]} {
    %c0 = arith.constant 0 : index
    %c0_0 = arith.constant 0 : index
    %0 = vector.load %arg1[%c0, %c0_0] : memref<256x128xbf16, #tpu.memory_space<vmem>>, vector<256x128xbf16>
    %1 = arith.extf %0 : vector<256x128xbf16> to vector<256x128xf32>
    %c0_1 = arith.constant 0 : index
    %c0_2 = arith.constant 0 : index
    %2 = vector.load %arg2[%c0_1, %c0_2] : memref<1x128xf32, #tpu.memory_space<vmem>>, vector<1x128xf32>
    %3 = vector.broadcast %2 : vector<1x128xf32> to vector<256x128xf32>
    %4 = arith.mulf %1, %3 : vector<256x128xf32>
    %c0_3 = arith.constant 0 : index
    %c0_4 = arith.constant 0 : index
    %5 = vector.load %arg3[%c0_3, %c0_4] : memref<1x128xf32, #tpu.memory_space<vmem>>, vector<1x128xf32>
    %6 = vector.broadcast %5 : vector<1x128xf32> to vector<256x128xf32>
    %7 = arith.addf %4, %6 : vector<256x128xf32>
    %cst = arith.constant 0.000000e+00 : f32
    %8 = vector.broadcast %cst : f32 to vector<256x128xf32>
    %9 = arith.maximumf %7, %8 : vector<256x128xf32>
    %c0_5 = arith.constant 0 : index
    %c0_6 = arith.constant 0 : index
    %10 = vector.load %arg4[%c0_5, %c0_6] : memref<256x128xf32, #tpu.memory_space<vmem>>, vector<256x128xf32>
    tpu.vector_store %arg4[%c0_5, %c0_6], %9 {strides = array<i32>} : memref<256x128xf32, #tpu.memory_space<vmem>>, vector<256x128xf32>,
    return
  }
  func.func @transform_0(%arg0: i32) -> (i32, i32) {
    %c0_i32 = arith.constant 0 : i32
    %c0_i32_0 = arith.constant 0 : i32
    return %arg0, %c0_i32 : i32, i32
  }
  func.func @transform_1(%arg0: i32) -> (i32, i32) {
    %c0_i32 = arith.constant 0 : i32
    %c0_i32_0 = arith.constant 0 : i32
    %c0_i32_1 = arith.constant 0 : i32
    return %c0_i32, %c0_i32_0 : i32, i32
  }
  func.func @transform_2(%arg0: i32) -> (i32, i32) {
    %c0_i32 = arith.constant 0 : i32
    %c0_i32_0 = arith.constant 0 : i32
    %c0_i32_1 = arith.constant 0 : i32
    return %c0_i32, %c0_i32_0 : i32, i32
  }
  func.func @transform_3(%arg0: i32) -> (i32, i32) {
    %c0_i32 = arith.constant 0 : i32
    %c0_i32_0 = arith.constant 0 : i32
    return %arg0, %c0_i32 : i32, i32
  }
}

</mosaic_0001>

<bundles_post_ra>
// kernel: conv_bn_relu.3
= control target key start
LH: loop header
LB: loop body
LE: loop exit
PB: predicated region body
PF: predicated region fallthrough
CT: control target
= control target key end

     0   :  { %s564_s12 = smov 0   ;;  %s711_s0 = inlined_call_operand.vmem [shape: bf16[512,128], index: 0, kind: input, shape index: {}]   ;;  %s712_s1 = inlined_call_operand.vmem [shape: f32[1,128], index: 1, kind: input, shape index: {}]   ;;  %s713_s2 = inlined_call_operand.vmem [shape: f32[1,128], index: 2, kind: input, shape index: {}]   ;;  %s714_s3 = inlined_call_operand.vmem [shape: f32[512,128], index: 3, kind: output, shape index: {}]  }
   0x1 LB: > { %s436_s13 = sadd.s32 4294967295, %s542_s12   ;;  %p440_p0 = scmp.ge.s32.totalorder %s542_s12, 1  ;;  %s542_s12 = sphi %s564_s12, %s13_s12  }
   0x2   : > { %p138_p1 = scmp.lt.s32.totalorder %s542_s12, 3 }
   0x4   : > { %p139_p2 = pnand %p440_p0, %p138_p1 }
   0x5   : > { %s441_s14 = sshll.u32 (!%p139_p2), %s436_s13, 5  ;;  %v583_v0 = vld [vmem:[%s712_s1] ss:$0 sm:$0xff] (!%p139_p2) }
   0x6   : > { %142 = sbr.rel (%p139_p2) target bundleno = 53 (0x35), region = 32  ;;  %p163_p3 = scmp.lt.s32.totalorder (!%p139_p2), %s441_s14, 63  ;;  %v592_v9 = vld [vmem:[%s713_s2] ss:$0 sm:$0xff] (!%p139_p2) }
   0xd   : > { %s716_s14 = smov (!%p163_p3, %s441_s14), 63 }
   0xe   : > { %s442_s15 = sshll.u32 %s716_s14, 2  ;;  %s444_s23 = sshll.u32 %s716_s14, 3 }
   0xf   : > { %s578_s18 = scalar_lea.vmem %s711_s0, %s442_s15  ;;  %s610_s26 = scalar_lea.vmem %s714_s3, %s444_s23 }
  0x10   : > { %v450_v1 = vld [vmem:[%s578_s18] sm:$0xff]   ;;  %v513_v2 = vld [vmem:[%s578_s18 + $0x8] sm:$0xff]   ;;  %v514_v3 = vld [vmem:[%s578_s18 + $0x10] sm:$0xff]  }
  0x11   : > { %v451_v4 = vunpack.c.l.bf16 %v450_v1  ;;  %v452_v5 = vunpack.c.h.bf16 %v450_v1  ;;  %v455_v6 = vunpack.c.l.bf16 %v513_v2  ;;  %v456_v7 = vunpack.c.h.bf16 %v513_v2  ;;  %v515_v8 = vld [vmem:[%s578_s18 + $0x18] sm:$0xff]   ;;  %v516_v30 = vld [vmem:[%s578_s18 + $0x20] sm:$0xff]   ;;  %v517_v31 = vld [vmem:[%s578_s18 + $0x28] sm:$0xff]  }
  0x12   : > { %v459_v10 = vunpack.c.l.bf16 %v514_v3  ;;  %v460_v11 = vunpack.c.h.bf16 %v514_v3  ;;  %v463_v12 = vunpack.c.l.bf16 %v515_v8  ;;  %v464_v13 = vunpack.c.h.bf16 %v515_v8  ;;  %v518_v36 = vld [vmem:[%s578_s18 + $0x30] sm:$0xff]   ;;  %v519_v37 = vld [vmem:[%s578_s18 + $0x38] sm:$0xff]   ;;  %v520_v3 = vld [vmem:[%s578_s18 + $0x40] sm:$0xff]  }
  0x13   : > { %v245_v14 = vmul.f32 %v451_v4, %v583_v0  ;;  %v246_v15 = vmul.f32 %v452_v5, %v583_v0  ;;  %v247_v16 = vmul.f32 %v455_v6, %v583_v0  ;;  %v248_v17 = vmul.f32 %v456_v7, %v583_v0  ;;  %v521_v4 = vld [vmem:[%s578_s18 + $0x48] sm:$0xff]  }
  0x14   : > { %v249_v18 = vmul.f32 %v459_v10, %v583_v0  ;;  %v250_v19 = vmul.f32 %v460_v11, %v583_v0  ;;  %v251_v20 = vmul.f32 %v463_v12, %v583_v0  ;;  %v252_v21 = vmul.f32 %v464_v13, %v583_v0  ;;  %v522_v10 = vld [vmem:[%s578_s18 + $0x50] sm:$0xff]   ;;  %v523_v11 = vld [vmem:[%s578_s18 + $0x58] sm:$0xff]  }
  0x15   : > { %v284_v22 = vadd.f32 %v592_v9, %v245_v14  ;;  %v285_v23 = vadd.f32 %v592_v9, %v246_v15  ;;  %v286_v24 = vadd.f32 %v592_v9, %v247_v16  ;;  %v287_v25 = vadd.f32 %v592_v9, %v248_v17 }
  0x16   : > { %v288_v26 = vadd.f32 %v592_v9, %v249_v18  ;;  %v289_v27 = vadd.f32 %v592_v9, %v250_v19  ;;  %v290_v28 = vadd.f32 %v592_v9, %v251_v20  ;;  %v291_v29 = vadd.f32 %v592_v9, %v252_v21 }
  0x17   : > { %v316_v32 = vmax.f32 %v284_v22, 0.0  ;;  %v317_v33 = vmax.f32 %v285_v23, 0.0  ;;  %v318_v34 = vmax.f32 %v286_v24, 0.0  ;;  %v319_v35 = vmax.f32 %v287_v25, 0.0 }
  0x18   : > { %v320_v38 = vmax.f32 %v288_v26, 0.0  ;;  %v321_v39 = vmax.f32 %v289_v27, 0.0  ;;  %v322_v40 = vmax.f32 %v290_v28, 0.0  ;;  %v323_v41 = vmax.f32 %v291_v29, 0.0 }
  0x19   : > { %348 = vst [vmem:[%s610_s26] sm:$0xff] %v316_v32  ;;  %349 = vst [vmem:[%s610_s26 + $0x8] sm:$0xff] %v317_v33  ;;  %v467_v42 = vunpack.c.l.bf16 %v516_v30  ;;  %v468_v43 = vunpack.c.h.bf16 %v516_v30  ;;  %v471_v44 = vunpack.c.l.bf16 %v517_v31  ;;  %v472_v45 = vunpack.c.h.bf16 %v517_v31 }
  0x1a   : > { %350 = vst [vmem:[%s610_s26 + $0x10] sm:$0xff] %v318_v34  ;;  %351 = vst [vmem:[%s610_s26 + $0x18] sm:$0xff] %v319_v35  ;;  %v475_v46 = vunpack.c.l.bf16 %v518_v36  ;;  %v476_v47 = vunpack.c.h.bf16 %v518_v36  ;;  %v479_v48 = vunpack.c.l.bf16 %v519_v37  ;;  %v480_v49 = vunpack.c.h.bf16 %v519_v37 }
  0x1b   : > { %352 = vst [vmem:[%s610_s26 + $0x20] sm:$0xff] %v320_v38  ;;  %353 = vst [vmem:[%s610_s26 + $0x28] sm:$0xff] %v321_v39  ;;  %v253_v50 = vmul.f32 %v467_v42, %v583_v0  ;;  %v254_v51 = vmul.f32 %v468_v43, %v583_v0  ;;  %v255_v52 = vmul.f32 %v471_v44, %v583_v0  ;;  %v483_v16 = vunpack.c.l.bf16 %v520_v3 }
  0x1c   : > { %354 = vst [vmem:[%s610_s26 + $0x30] sm:$0xff] %v322_v40  ;;  %355 = vst [vmem:[%s610_s26 + $0x38] sm:$0xff] %v323_v41  ;;  %v256_v53 = vmul.f32 %v472_v45, %v583_v0  ;;  %v257_v54 = vmul.f32 %v475_v46, %v583_v0  ;;  %v258_v55 = vmul.f32 %v476_v47, %v583_v0  ;;  %v484_v17 = vunpack.c.h.bf16 %v520_v3  ;;  %v524_v40 = vld [vmem:[%s578_s18 + $0x60] sm:$0xff]   ;;  %v525_v41 = vld [vmem:[%s578_s18 + $0x68] sm:$0xff]  }
  0x1d   : > { %v259_v56 = vmul.f32 %v479_v48, %v583_v0  ;;  %v260_v57 = vmul.f32 %v480_v49, %v583_v0  ;;  %v292_v58 = vadd.f32 %v592_v9, %v253_v50  ;;  %v293_v59 = vadd.f32 %v592_v9, %v254_v51  ;;  %v526_v46 = vld [vmem:[%s578_s18 + $0x70] sm:$0xff]   ;;  %v527_v47 = vld [vmem:[%s578_s18 + $0x78] sm:$0xff]  }
  0x1e   : > { %v294_v60 = vadd.f32 %v592_v9, %v255_v52  ;;  %v295_v61 = vadd.f32 %v592_v9, %v256_v53  ;;  %v296_v62 = vadd.f32 %v592_v9, %v257_v54  ;;  %v297_v63 = vadd.f32 %v592_v9, %v258_v55 }
  0x1f   : > { %v298_v1 = vadd.f32 %v592_v9, %v259_v56  ;;  %v299_v2 = vadd.f32 %v592_v9, %v260_v57  ;;  %v324_v5 = vmax.f32 %v292_v58, 0.0  ;;  %v325_v6 = vmax.f32 %v293_v59, 0.0 }
  0x20   : > { %v326_v7 = vmax.f32 %v294_v60, 0.0  ;;  %v327_v8 = vmax.f32 %v295_v61, 0.0  ;;  %v328_v12 = vmax.f32 %v296_v62, 0.0  ;;  %v329_v13 = vmax.f32 %v297_v63, 0.0 }
  0x21   : > { %v330_v14 = vmax.f32 %v298_v1, 0.0  ;;  %v331_v15 = vmax.f32 %v299_v2, 0.0  ;;  %356 = vst [vmem:[%s610_s26 + $0x40] sm:$0xff] %v324_v5  ;;  %357 = vst [vmem:[%s610_s26 + $0x48] sm:$0xff] %v325_v6  ;;  %v487_v18 = vunpack.c.l.bf16 %v521_v4  ;;  %v488_v19 = vunpack.c.h.bf16 %v521_v4 }
  0x22   : > { %358 = vst [vmem:[%s610_s26 + $0x50] sm:$0xff] %v326_v7  ;;  %359 = vst [vmem:[%s610_s26 + $0x58] sm:$0xff] %v327_v8  ;;  %v491_v20 = vunpack.c.l.bf16 %v522_v10  ;;  %v492_v21 = vunpack.c.h.bf16 %v522_v10  ;;  %v495_v22 = vunpack.c.l.bf16 %v523_v11  ;;  %v496_v23 = vunpack.c.h.bf16 %v523_v11 }
  0x23   : > { %360 = vst [vmem:[%s610_s26 + $0x60] sm:$0xff] %v328_v12  ;;  %361 = vst [vmem:[%s610_s26 + $0x68] sm:$0xff] %v329_v13  ;;  %v261_v24 = vmul.f32 %v483_v16, %v583_v0  ;;  %v262_v25 = vmul.f32 %v484_v17, %v583_v0  ;;  %v263_v26 = vmul.f32 %v487_v18, %v583_v0  ;;  %v499_v52 = vunpack.c.l.bf16 %v524_v40 }
  0x24   : > { %362 = vst [vmem:[%s610_s26 + $0x70] sm:$0xff] %v330_v14  ;;  %363 = vst [vmem:[%s610_s26 + $0x78] sm:$0xff] %v331_v15  ;;  %v264_v27 = vmul.f32 %v488_v19, %v583_v0  ;;  %v265_v28 = vmul.f32 %v491_v20, %v583_v0  ;;  %v266_v29 = vmul.f32 %v492_v21, %v583_v0  ;;  %v500_v53 = vunpack.c.h.bf16 %v524_v40 }
  0x25   : > { %v267_v30 = vmul.f32 %v495_v22, %v583_v0  ;;  %v268_v31 = vmul.f32 %v496_v23, %v583_v0  ;;  %v300_v32 = vadd.f32 %v592_v9, %v261_v24  ;;  %v301_v33 = vadd.f32 %v592_v9, %v262_v25 }
  0x26   : > { %v302_v34 = vadd.f32 %v592_v9, %v263_v26  ;;  %v303_v35 = vadd.f32 %v592_v9, %v264_v27  ;;  %v304_v36 = vadd.f32 %v592_v9, %v265_v28  ;;  %v305_v37 = vadd.f32 %v592_v9, %v266_v29 }
  0x27   : > { %v306_v38 = vadd.f32 %v592_v9, %v267_v30  ;;  %v307_v39 = vadd.f32 %v592_v9, %v268_v31  ;;  %v332_v42 = vmax.f32 %v300_v32, 0.0  ;;  %v333_v43 = vmax.f32 %v301_v33, 0.0 }
  0x28   : > { %v334_v44 = vmax.f32 %v302_v34, 0.0  ;;  %v335_v45 = vmax.f32 %v303_v35, 0.0  ;;  %v336_v48 = vmax.f32 %v304_v36, 0.0  ;;  %v337_v49 = vmax.f32 %v305_v37, 0.0 }
  0x29   : > { %v338_v50 = vmax.f32 %v306_v38, 0.0  ;;  %v339_v51 = vmax.f32 %v307_v39, 0.0  ;;  %364 = vst [vmem:[%s610_s26 + $0x80] sm:$0xff] %v332_v42  ;;  %365 = vst [vmem:[%s610_s26 + $0x88] sm:$0xff] %v333_v43  ;;  %v503_v54 = vunpack.c.l.bf16 %v525_v41  ;;  %v504_v55 = vunpack.c.h.bf16 %v525_v41 }
  0x2a   : > { %366 = vst [vmem:[%s610_s26 + $0x90] sm:$0xff] %v334_v44  ;;  %367 = vst [vmem:[%s610_s26 + $0x98] sm:$0xff] %v335_v45  ;;  %v507_v56 = vunpack.c.l.bf16 %v526_v46  ;;  %v508_v57 = vunpack.c.h.bf16 %v526_v46  ;;  %v511_v58 = vunpack.c.l.bf16 %v527_v47  ;;  %v512_v59 = vunpack.c.h.bf16 %v527_v47 }
  0x2b   : > { %368 = vst [vmem:[%s610_s26 + $0xa0] sm:$0xff] %v336_v48  ;;  %369 = vst [vmem:[%s610_s26 + $0xa8] sm:$0xff] %v337_v49  ;;  %v269_v60 = vmul.f32 %v499_v52, %v583_v0  ;;  %v270_v61 = vmul.f32 %v500_v53, %v583_v0  ;;  %v271_v62 = vmul.f32 %v503_v54, %v583_v0 }
  0x2c   : > { %370 = vst [vmem:[%s610_s26 + $0xb0] sm:$0xff] %v338_v50  ;;  %371 = vst [vmem:[%s610_s26 + $0xb8] sm:$0xff] %v339_v51  ;;  %v272_v63 = vmul.f32 %v504_v55, %v583_v0  ;;  %v273_v1 = vmul.f32 %v507_v56, %v583_v0  ;;  %v274_v2 = vmul.f32 %v508_v57, %v583_v0 }
  0x2d   : > { %v275_v3 = vmul.f32 %v511_v58, %v583_v0  ;;  %v276_v4 = vmul.f32 %v512_v59, %v583_v0  ;;  %v308_v5 = vadd.f32 %v592_v9, %v269_v60  ;;  %v309_v6 = vadd.f32 %v592_v9, %v270_v61 }
  0x2e   : > { %v310_v7 = vadd.f32 %v592_v9, %v271_v62  ;;  %v311_v8 = vadd.f32 %v592_v9, %v272_v63  ;;  %v312_v10 = vadd.f32 %v592_v9, %v273_v1  ;;  %v313_v11 = vadd.f32 %v592_v9, %v274_v2 }
  0x2f   : > { %v314_v0 = vadd.f32 %v592_v9, %v275_v3  ;;  %v315_v12 = vadd.f32 %v592_v9, %v276_v4  ;;  %v340_v13 = vmax.f32 %v308_v5, 0.0  ;;  %v341_v14 = vmax.f32 %v309_v6, 0.0 }
  0x30   : > { %v342_v15 = vmax.f32 %v310_v7, 0.0  ;;  %v343_v16 = vmax.f32 %v311_v8, 0.0  ;;  %v344_v17 = vmax.f32 %v312_v10, 0.0  ;;  %v345_v18 = vmax.f32 %v313_v11, 0.0 }
  0x31   : > { %v346_v19 = vmax.f32 %v314_v0, 0.0  ;;  %v347_v20 = vmax.f32 %v315_v12, 0.0  ;;  %372 = vst [vmem:[%s610_s26 + $0xc0] sm:$0xff] %v340_v13  ;;  %373 = vst [vmem:[%s610_s26 + $0xc8] sm:$0xff] %v341_v14 }
  0x32   : > { %374 = vst [vmem:[%s610_s26 + $0xd0] sm:$0xff] %v342_v15  ;;  %375 = vst [vmem:[%s610_s26 + $0xd8] sm:$0xff] %v343_v16 }
  0x33   : > { %376 = vst [vmem:[%s610_s26 + $0xe0] sm:$0xff] %v344_v17  ;;  %377 = vst [vmem:[%s610_s26 + $0xe8] sm:$0xff] %v345_v18 }
  0x34   : > { %378 = vst [vmem:[%s610_s26 + $0xf0] sm:$0xff] %v346_v19  ;;  %379 = vst [vmem:[%s610_s26 + $0xf8] sm:$0xff] %v347_v20 }
  0x35 PF: > { %s13_s12 = sadd.s32 1, %s542_s12  }
  0x36   : > { %p10_p4 = scmp.ge.s32.totalorder %s13_s12, 4  }
  0x38   :  { %12 = sbr.rel (!%p10_p4) target bundleno = 1 (0x1), region = 62 }

// kernel: conv_bn_relu.2
= control target key start
LH: loop header
LB: loop body
LE: loop exit
PB: predicated region body
PF: predicated region fallthrough
CT: control target
= control target key end

     0   :  { %s1724_s12 = smov 0   ;;  %s1726_s13 = smov 0   ;;  %s2363_s0 = inlined_call_operand.vmem [shape: bf16[2,18,18,16], index: 0, kind: input, shape index: {}]   ;;  %s2364_s1 = inlined_call_operand.vmem [shape: bf16[144,128], index: 1, kind: input, shape index: {}]   ;;  %s2365_s2 = inlined_call_operand.vmem [shape: bf16[2,256,128], index: 2, kind: output, shape index: {0}]   ;;  %s2366_s3 = inlined_call_operand.vmem [shape: f32[2,2,2,128], index: 3, kind: output, shape index: {1}]  }
   0x1   :  { %s1728_s14 = smov 0   ;;  %s1730_s15 = smov 0  }
   0x2   :  { %s1732_s16 = smov 0  }
   0x3 LB: > { %s23_s17 = sadd.s32 1, %s1686_s14  ;;  %s26_s18 = sadd.s32 1, %s1690_s15  ;;  %s1694_s16 = sphi %s1732_s16, %s14_s16   ;;  %s1690_s15 = sphi %s1730_s15, %s2374_s15   ;;  %s1686_s14 = sphi %s1728_s14, %s2373_s14   ;;  %s1682_s13 = sphi %s1726_s13, %s2372_s13   ;;  %s1678_s12 = sphi %s1724_s12, %s2371_s12  }
   0x4   : > { %p24_p0 = scmp.ge.s32.totalorder %s23_s17, 2  ;;  %p1421_p1 = scmp.ge.s32.totalorder %s1694_s16, 1 }
   0x5   : > { %p156_p2 = scmp.lt.s32.totalorder %s1694_s16, 5 }
   0x6   : > { %s2376_s17 = smov (%p24_p0, %s23_s17), 0  ;;  %s2378_s18 = smov (!%p24_p0, %s26_s18), %s1690_s15 }
   0x7   : > { %p157_p3 = pnand %p1421_p1, %p156_p2  ;;  %p28_p4 = scmp.ge.s32.totalorder %s2378_s18, 2 }
   0x8   : > { %p192_p5 = scmp.lt.s32.totalorder (!%p157_p3), %s1682_s13, 1  ;;  %v1645_v0 = vld [vmem:[%s2364_s1] sm:$0xff] (!%p157_p3)   ;;  %v1696_v1 = vmov (!%p157_p3), 0   ;;  %s1506_s21 = smul.u32 (!%p157_p3), 96, %s1678_s12  ;;  %vm469_vm0 = vcmask (!%p157_p3), 1042432   ;;  %v1646_v2 = vld [vmem:[%s2364_s1 + $0x8] sm:$0xff] (!%p157_p3)  }
   0x9   : > { %s2380_s18 = smov (%p28_p4, %s2378_s18), 0  ;;  %160 = sbr.rel (%p157_p3) target bundleno = 537 (0x219), region = 28 }
   0xa   : > { %1029 = vmatprep.subr.bf16.mxu0 (!%p157_p3), %v1696_v1  ;;  %1570 = vmatprep.subr.bf16.mxu1 (!%p157_p3), %v1696_v1  ;;  %vm470_vm1 = vcmask (!%p157_p3), 1046532   ;;  %vm250_vm2 = vsmask.f32 (!%p157_p3), 3328  ;;  %vm251_vm3 = vsmask.f32 (!%p157_p3), 7440  ;;  %v1647_v3 = vld [vmem:[%s2364_s1 + $0x10] sm:$0xff] (!%p157_p3)  }
   0xb   : > { %1030 = vmatpush1.bf16.msra.mxu0 (!%p157_p3), %v1645_v0  ;;  %1579 = vmatpush1.bf16.msra.mxu1 (!%p157_p3), %v1645_v0  ;;  %v1649_v12 = vld [vmem:[%s2364_s1 + $0x18] sm:$0xff] (!%p157_p3)   ;;  %s1697_s6 = smov (!%p157_p3), 48   ;;  %vm1811_vm4 = vmor (!%p157_p3), %vm469_vm0, %vm470_vm1  ;;  %s1698_s7 = smov (!%p157_p3), 96   ;;  %v1650_v47 = vld [vmem:[%s2364_s1 + $0x20] sm:$0xff] (!%p157_p3)   ;;  %vm798_vm6 = vcmask (!%p157_p3), 130048   ;;  %vm823_vm7 = vcmask (!%p157_p3), 261120  }
   0xc   : > { %1031 = vmatprep.subr.bf16.mxu0 (!%p157_p3), %v1696_v1  ;;  %1571 = vmatprep.subr.bf16.mxu1 (!%p157_p3), %v1696_v1  ;;  %vm1838_vm5 = vmor (!%p157_p3), %vm250_vm2, %vm251_vm3  ;;  %s1699_s10 = smov (!%p157_p3), 32   ;;  %v1651_v0 = vld [vmem:[%s2364_s1 + $0x28] sm:$0xff] (!%p157_p3)   ;;  %s1700_s20 = smov (!%p157_p3), 80   ;;  %vm840_vm8 = vcmask (!%p157_p3), 392192   ;;  %vm857_vm9 = vcmask (!%p157_p3), 523264   ;;  %vm874_vm10 = vcmask (!%p157_p3), 654336  }
   0xd   : > { %s1701_s23 = smov (!%p157_p3), 64   ;;  %s1702_s26 = smov (!%p157_p3), 16   ;;  %vm891_vm11 = vcmask (!%p157_p3), 785408   ;;  %vm908_vm12 = vcmask (!%p157_p3), 916480   ;;  %vm1281_vm13 = vcmask (!%p157_p3), 1040384  }
   0xe   : > { %s1703_s30 = smov (!%p157_p3), 112   ;;  %p209_p7 = scmp.lt.s32.totalorder (!%p157_p3), %s1678_s12, 1 }
   0xf   : > { %1032 = vmatpush1.bf16.msra.mxu0 (!%p157_p3), %v1646_v2  ;;  %1580 = vmatpush1.bf16.msra.mxu1 (!%p157_p3), %v1646_v2 }
  0x10   : > { %s2382_s13 = smov (!%p192_p5, %s1682_s13), 1  ;;  %1033 = vmatprep.subr.bf16.mxu0 %v1696_v1  ;;  %1572 = vmatprep.subr.bf16.mxu1 %v1696_v1 }
  0x11   : > { %s1588_s22 = smul.u32 216, %s2382_s13  ;;  %s1424_s4 = sshll.u32 %s2382_s13, 5 }
  0x13   : > { %s196_s27 = scalar_lea.vmem %s2363_s0, %s1588_s22  ;;  %1034 = vmatpush1.bf16.msra.mxu0 %v1647_v3  ;;  %1581 = vmatpush1.bf16.msra.mxu1 %v1647_v3 }
  0x14   : > { %s1773_s28 = scalar_lea.vmem %s196_s27, %s1506_s21  ;;  %1035 = vmatprep.subr.bf16.mxu0 %v1696_v1  ;;  %1573 = vmatprep.subr.bf16.mxu1 %v1696_v1 }
  0x15   : > { %v223_v4 = vld [vmem:[%s1773_s28 + $0xc] sm:$0xf]  ;;  %v224_v5 = vld [vmem:[%s1773_s28 + $0x10] sm:$0xf]  ;;  %v1781_v6 = vld [vmem:[%s1773_s28 + $0x18] sm:$0xf] }
  0x16   : > { %v287_v7 = vshll.u32 %v224_v5, 16  ;;  %v291_v8 = vshrl.u32 %v224_v5, 16  ;;  %v1785_v9 = vcombine.low %v223_v4, %v224_v5  ;;  %v278_v10 = vshrl.u32 %v223_v4, 16  ;;  %v1788_v11 = vld [vmem:[%s1773_s28 + $0x1c] sm:$0xf] }
  0x17   : > { %v281_v13 = vshll.u32 %v223_v4, 16  ;;  %v302_v14 = vshrl.u32 %v1781_v6, 16  ;;  %v305_v15 = vshll.u32 %v1781_v6, 16  ;;  %v315_v16 = vshrl.u32 %v1788_v11, 16  ;;  %v1797_v17 = vld [vmem:[%s1773_s28] sm:$0xf]  ;;  %1036 = vmatpush1.bf16.msra.mxu0 %v1649_v12  ;;  %1582 = vmatpush1.bf16.msra.mxu1 %v1649_v12 }
  0x18   : > { %v293_v18 = vrot.slane %v291_v8, 4  ;;  %703 = vrot.lane.b32.xlu1 %v1785_v9, %s1697_s6  ;;  %v280_v19 = vrot.slane %v278_v10, 4  ;;  %v1803_v20 = vcombine.low %v1781_v6, %v1788_v11  ;;  %v1806_v21 = vld [vmem:[%s1773_s28 + $0x4] sm:$0xf]  ;;  %v222_v22 = vld [vmem:[%s1773_s28 + $0x8] sm:$0x1]  ;;  %1037 = vmatprep.subr.bf16.mxu0 %v1696_v1 }
  0x19   : > { %v283_v24 = vrot.slane %v281_v13, 5  ;;  %v273_v25 = vshll.u32 %v222_v22, 16  ;;  %v1431_v26 = vrot.slane %v1797_v17, 9  ;;  %v474_v27 = vrot.slane %v1806_v21, 5  ;;  %v225_v28 = vld [vmem:[%s1773_s28 + $0x14] sm:$0x1]  ;;  %1574 = vmatprep.subr.bf16.mxu1 %v1696_v1 }
  0x1a   : > { %v477_v29 = vrot.slane %v222_v22, 5  ;;  %v1432_v30 = vrot.slane %v223_v4, 9  ;;  %v481_v31 = vrot.slane %v224_v5, 5  ;;  %v484_v32 = vrot.slane %v225_v28, 5  ;;  %v1820_v33 = vld [vmem:[%s1773_s28 + $0x20] sm:$0x1] }
  0x1b   : > { %v475_v34 = vsel %vm1811_vm4, %v1431_v26, %v474_v27  ;;  %v476_v35 = vrot.slane %v474_v27, 4  ;;  %v1433_v36 = vrot.slane %v1781_v6, 9  ;;  %v488_v37 = vrot.slane %v1788_v11, 5  ;;  %1038 = vmatpush1.bf16.msra.mxu0 %v1650_v47  ;;  %1583 = vmatpush1.bf16.msra.mxu1 %v1650_v47  ;;  %v1652_v27 = vld [vmem:[%s2364_s1 + $0x30] sm:$0xff]   ;;  %v1654_v47 = vld [vmem:[%s2364_s1 + $0x38] sm:$0xff]  }
  0x1c   : > { %760 = vrot.lane.b32.xlu1 %v1803_v20, %s1698_s7  ;;  %v482_v38 = vsel %vm1811_vm4, %v1432_v30, %v481_v31  ;;  %v483_v39 = vrot.slane %v481_v31, 4  ;;  %v491_v40 = vrot.slane %v1820_v33, 5  ;;  %v284_v41 = vor.u32 %v283_v24, %v280_v19  ;;  %1039 = vmatprep.subr.bf16.mxu0 %v1696_v1  ;;  %v1891_v30 = vld [vmem:[%s1773_s28 + $0x2c] sm:$0x1] }
  0x1d   : > { %v478_v42 = vsel %vm1811_vm4, %v476_v35, %v477_v29  ;;  %v489_v43 = vsel %vm1811_vm4, %v1433_v36, %v488_v37  ;;  %v490_v44 = vrot.slane %v488_v37, 4  ;;  %v289_v46 = vrot.slane %v287_v7, 5  ;;  %v1870_v7 = vld [vmem:[%s1773_s28 + $0x24] sm:$0xf]  ;;  %1575 = vmatprep.subr.bf16.mxu1 %v1696_v1  ;;  %v1898_v35 = vld [vmem:[%s1773_s28 + $0x30] sm:$0xf] }
  0x1e   : > { %v1457_v48 = vcombine.low %v475_v34, %v478_v42  ;;  %v485_v49 = vsel %vm1811_vm4, %v483_v39, %v484_v32  ;;  %v285_v50 = vrot.slane %v284_v41, 4  ;;  %v297_v51 = vshll.u32 %v225_v28, 16  ;;  %v1910_v41 = vld [vmem:[%s1773_s28 + $0x38] sm:$0x1] }
  0x1f   : > { %v1458_v52 = vcombine.low %v482_v38, %v485_v49  ;;  %v492_v53 = vsel %vm1811_vm4, %v490_v44, %v491_v40  ;;  %v294_v54 = vor.u32 %v293_v18, %v289_v46  ;;  %v254_v55 = vshrl.u32 %v1797_v17, 16  ;;  %v1878_v18 = vld [vmem:[%s1773_s28 + $0x28] sm:$0xf]  ;;  %1040 = vmatpush1.bf16.msra.mxu0 %v1651_v0  ;;  %1584 = vmatpush1.bf16.msra.mxu1 %v1651_v0  ;;  %v1907_v40 = vld [vmem:[%s1773_s28 + $0x34] sm:$0xf] }
  0x20   : > { %684 = vrot.lane.b32.xlu0 %v1457_v48, %s1699_s10  ;;  %705 = vrot.lane.b32.xlu1 %v1803_v20, %s1697_s6  ;;  %v1855_v56 = vcombine.low %v489_v43, %v492_v53  ;;  %v290_v57 = vsel %vm1838_vm5, %v285_v50, %v289_v46  ;;  %v299_v58 = vrot.slane %v297_v51, 5  ;;  %v257_v59 = vshll.u32 %v1797_v17, 16 }
  0x21   : > { %v295_v60 = vrot.slane %v294_v54, 4  ;;  %v256_v61 = vrot.slane %v254_v55, 4  ;;  %v263_v62 = vshll.u32 %v1806_v21, 16  ;;  %v267_v63 = vshrl.u32 %v1806_v21, 16  ;;  %1041 = vmatprep.subr.bf16.mxu0 %v1696_v1  ;;  %1576 = vmatprep.subr.bf16.mxu1 %v1696_v1 }
  0x22   : > { %v259_v2 = vrot.slane %v257_v59, 5  ;;  %v275_v3 = vrot.slane %v273_v25, 5  ;;  %v304_v4 = vrot.slane %v302_v14, 4  ;;  %v307_v5 = vrot.slane %v305_v15, 5  ;;  %1480 = vmatprep.mubr.msk.bf16.mxu0 %vm798_vm6, %v1855_v56 }
  0x23   : > { %v300_v8 = vsel %vm1838_vm5, %v295_v60, %v299_v58  ;;  %v265_v10 = vrot.slane %v263_v62, 5  ;;  %v269_v12 = vrot.slane %v267_v63, 4  ;;  %v311_v13 = vshll.u32 %v1788_v11, 16  ;;  %1042 = vmatpush1.bf16.msra.mxu0 %v1652_v27  ;;  %1585 = vmatpush1.bf16.msra.mxu1 %v1652_v27  ;;  %v237_v27 = vld [vmem:[%s1773_s28 + $0x44] sm:$0x1] }
  0x24   : > { %741 = vrot.lane.b32.xlu0 %v1458_v52, %s1700_s20  ;;  %743 = vrot.lane.b32.xlu1 %v1855_v56, %s1700_s20  ;;  %v1450_v6 = vcombine.low %v290_v57, %v300_v8  ;;  %v260_v14 = vor.u32 %v259_v2, %v256_v61  ;;  %v308_v15 = vor.u32 %v307_v5, %v304_v4  ;;  %v317_v19 = vrot.slane %v315_v16, 4  ;;  %v1927_v57 = vld [vmem:[%s1773_s28 + $0x3c] sm:$0xf] }
  0x25   : > { %v270_v22 = vor.u32 %v269_v12, %v265_v10  ;;  %v313_v24 = vrot.slane %v311_v13, 5  ;;  %v321_v25 = vshll.u32 %v1820_v33, 16  ;;  %v326_v26 = vshrl.u32 %v1870_v7, 16  ;;  %1043 = vmatprep.subr.bf16.mxu0 %v1696_v1  ;;  %1577 = vmatprep.subr.bf16.mxu1 %v1696_v1 }
  0x26   : > { %v261_v28 = vrot.slane %v260_v14, 4  ;;  %v309_v29 = vrot.slane %v308_v15, 4  ;;  %v329_v11 = vshll.u32 %v1870_v7, 16  ;;  %v335_v16 = vshll.u32 %v1878_v18, 16 }
  0x27   : > { %v271_v31 = vrot.slane %v270_v22, 4  ;;  %v318_v32 = vor.u32 %v317_v19, %v313_v24  ;;  %v323_v33 = vrot.slane %v321_v25, 5  ;;  %v328_v34 = vrot.slane %v326_v26, 4  ;;  %1044 = vmatpush1.bf16.msra.mxu0 %v1654_v47  ;;  %1586 = vmatpush1.bf16.msra.mxu1 %v1654_v47 }
  0x28   : > { %686 = vrot.lane.b32.xlu0 %v1458_v52, %s1699_s10  ;;  %722 = vrot.lane.b32.xlu1 %v1450_v6, %s1701_s23  ;;  %v266_v36 = vsel %vm1838_vm5, %v261_v28, %v265_v10  ;;  %v314_v37 = vsel %vm1838_vm5, %v309_v29, %v313_v24  ;;  %v331_v38 = vrot.slane %v329_v11, 5  ;;  %v337_v39 = vrot.slane %v335_v16, 5 }
  0x29   : > { %v276_v42 = vsel %vm1838_vm5, %v271_v31, %v275_v3  ;;  %v319_v43 = vrot.slane %v318_v32, 4  ;;  %v339_v44 = vshrl.u32 %v1878_v18, 16  ;;  %v345_v46 = vshll.u32 %v1891_v30, 16  ;;  %v1655_v3 = vld [vmem:[%s2364_s1 + $0x40] sm:$0xff]   ;;  %1045 = vmatprep.subr.bf16.mxu0 %v1696_v1  ;;  %1578 = vmatprep.subr.bf16.mxu1 %v1696_v1 }
  0x2a   : > { %v1449_v48 = vcombine.low %v266_v36, %v276_v42  ;;  %v332_v49 = vor.u32 %v331_v38, %v328_v34  ;;  %v350_v50 = vshrl.u32 %v1898_v35, 16  ;;  %v353_v51 = vshll.u32 %v1898_v35, 16 }
  0x2b   : > { %v324_v52 = vsel %vm1838_vm5, %v319_v43, %v323_v33  ;;  %v341_v53 = vrot.slane %v339_v44, 4  ;;  %v347_v54 = vrot.slane %v345_v46, 5  ;;  %v359_v55 = vshll.u32 %v1907_v40, 16  ;;  %1046 = vmatpush1.bf16.msra.mxu0 %v1655_v3  ;;  %1587 = vmatpush1.bf16.msra.mxu1 %v1655_v3  ;;  %v1976_v43 = vld [vmem:[%s1773_s28 + $0x48] sm:$0xf] }
  0x2c   : > { %644 = vrot.lane.b32.xlu0 %v1449_v48, %s1702_s26  ;;  %646 = vrot.lane.b32.xlu1 %v1450_v6, %s1702_s26  ;;  %v1931_v58 = vcombine.low %v314_v37, %v324_v52  ;;  %v333_v59 = vrot.slane %v332_v49, 4  ;;  %v352_v60 = vrot.slane %v350_v50, 4  ;;  %v355_v61 = vrot.slane %v353_v51, 5  ;;  %v1945_v6 = vld [vmem:[%s1773_s28 + $0x40] sm:$0xf] }
  0x2d   : > { %v342_v62 = vor.u32 %v341_v53, %v337_v39  ;;  %v361_v63 = vrot.slane %v359_v55, 5  ;;  %v363_v0 = vshrl.u32 %v1907_v40, 16  ;;  %v369_v2 = vshll.u32 %v1910_v41, 16  ;;  %v1982_v48 = vld [vmem:[%s1773_s28 + $0x4c] sm:$0xf] }
  0x2e   : > { %v356_v4 = vor.u32 %v355_v61, %v352_v60  ;;  %v1435_v5 = vrot.slane %v1898_v35, 9  ;;  %v338_v8 = vsel %vm1838_vm5, %v333_v59, %v337_v39  ;;  %v502_v13 = vrot.slane %v1907_v40, 5 }
  0x2f   : > { %v343_v10 = vrot.slane %v342_v62, 4  ;;  %v365_v12 = vrot.slane %v363_v0, 4  ;;  %v505_v15 = vrot.slane %v1910_v41, 5  ;;  %v374_v19 = vshrl.u32 %v1927_v57, 16 }
  0x30   : > { %779 = vrot.lane.b32.xlu0 %v1931_v58, %s1703_s30  ;;  %v357_v14 = vrot.slane %v356_v4, 4  ;;  %v377_v1 = vshll.u32 %v1927_v57, 16  ;;  %v371_v25 = vrot.slane %v369_v2, 5  ;;  %v504_v26 = vrot.slane %v502_v13, 4 }
  0x31   : > { %v348_v22 = vsel %vm1838_vm5, %v343_v10, %v347_v54  ;;  %v366_v24 = vor.u32 %v365_v12, %v361_v63  ;;  %v1959_v29 = vcombine.low %v1870_v7, %v1878_v18  ;;  %v503_v11 = vsel %vm1811_vm4, %v1435_v5, %v502_v13  ;;  %v2004_v5 = vld [vmem:[%s1773_s28 + $0x50] sm:$0x1]  ;;  %v2014_v13 = vld [vmem:[%s1773_s28 + $0x54] sm:$0xf] }
  0x32   : > { %v1955_v28 = vcombine.low %v338_v8, %v348_v22  ;;  %v387_v16 = vshrl.u32 %v1945_v6, 16  ;;  %v362_v31 = vsel %vm1838_vm5, %v357_v14, %v361_v63  ;;  %v376_v33 = vrot.slane %v374_v19, 4 }
  0x33   : > { %v367_v32 = vrot.slane %v366_v24, 4  ;;  %v379_v34 = vrot.slane %v377_v1, 5  ;;  %v506_v36 = vsel %vm1811_vm4, %v504_v26, %v505_v15  ;;  %v383_v37 = vshll.u32 %v1945_v6, 16 }
  0x34   : > { %781 = vrot.lane.b32.xlu1 %v1955_v28, %s1703_s30  ;;  %724 = vrot.lane.b32.xlu0 %v1931_v58, %s1701_s23  ;;  %v389_v38 = vrot.slane %v387_v16, 4  ;;  %v393_v39 = vshll.u32 %v237_v27, 16  ;;  %v509_v47 = vrot.slane %v1945_v6, 5  ;;  %v1984_v49 = vcombine.low %v503_v11, %v506_v36  ;;  %v2040_v11 = vld [vmem:[%s1773_s28 + $0x5c] sm:$0x1] }
  0x35   : > { %v372_v41 = vsel %vm1838_vm5, %v367_v32, %v371_v25  ;;  %v380_v42 = vor.u32 %v379_v34, %v376_v33  ;;  %v385_v46 = vrot.slane %v383_v37, 5  ;;  %v398_v53 = vshrl.u32 %v1976_v43, 16  ;;  %v2049_v37 = vld [vmem:[%s1773_s28 + $0x60] sm:$0xf] }
  0x36   : > { %v1978_v44 = vcombine.low %v362_v31, %v372_v41  ;;  %v395_v52 = vrot.slane %v393_v39, 5  ;;  %v401_v54 = vshll.u32 %v1976_v43, 16  ;;  %v1994_v55 = vcombine.low %v1927_v57, %v1945_v6  ;;  %v2019_v6 = vld [vmem:[%s1773_s28 + $0x58] sm:$0xf] }
  0x37   : > { %v381_v50 = vrot.slane %v380_v42, 4  ;;  %v390_v51 = vor.u32 %v389_v38, %v385_v46  ;;  %v411_v59 = vshrl.u32 %v1982_v48, 16  ;;  %v495_v60 = vrot.slane %v1878_v18, 5 }
  0x38   : > { %652 = vrot.lane.b32.xlu1 %v1978_v44, %s1702_s26  ;;  %762 = vrot.lane.b32.xlu0 %v1959_v29, %s1698_s7  ;;  %v1436_v62 = vrot.slane %v1927_v57, 9  ;;  %v511_v63 = vrot.slane %v509_v47, 4  ;;  %v512_v0 = vrot.slane %v237_v27, 5  ;;  %v1434_v3 = vrot.slane %v1870_v7, 9 }
  0x39   : > { %v391_v61 = vrot.slane %v390_v51, 4  ;;  %v386_v2 = vsel %vm1838_vm5, %v381_v50, %v385_v46  ;;  %v498_v4 = vrot.slane %v1891_v30, 5  ;;  %v407_v8 = vshll.u32 %v1982_v48, 16 }
  0x3a   : > { %v497_v57 = vrot.slane %v495_v60, 4  ;;  %v400_v10 = vrot.slane %v398_v53, 4  ;;  %v403_v12 = vrot.slane %v401_v54, 5  ;;  %v413_v30 = vrot.slane %v411_v59, 4 }
  0x3b   : > { %v396_v18 = vsel %vm1838_vm5, %v391_v61, %v395_v52  ;;  %v2016_v7 = vrot.slane %v407_v8, 5  ;;  %v510_v14 = vsel %vm1811_vm4, %v1436_v62, %v509_v47  ;;  %v496_v19 = vsel %vm1811_vm4, %v1434_v3, %v495_v60  ;;  %v2062_v52 = vld [vmem:[%s1773_s28 + $0x64] sm:$0xf] }
  0x3c   : > { %692 = vrot.lane.b32.xlu1 %v1984_v49, %s1699_s10  ;;  %648 = vrot.lane.b32.xlu0 %v1931_v58, %s1702_s26  ;;  %v513_v58 = vsel %vm1811_vm4, %v511_v63, %v512_v0  ;;  %v2025_v15 = vcombine.low %v386_v2, %v396_v18  ;;  %v417_v1 = vshll.u32 %v2004_v5, 16  ;;  %v422_v22 = vshrl.u32 %v2014_v13, 16  ;;  %v2069_v0 = vld [vmem:[%s1773_s28 + $0x68] sm:$0x1] }
  0x3d   : > { %v499_v24 = vsel %vm1811_vm4, %v497_v57, %v498_v4  ;;  %v404_v25 = vor.u32 %v403_v12, %v400_v10  ;;  %v425_v26 = vshll.u32 %v2014_v13, 16  ;;  %v435_v27 = vshrl.u32 %v2019_v6, 16 }
  0x3e   : > { %v414_v16 = vor.u32 %v413_v30, %v2016_v7  ;;  %v424_v31 = vrot.slane %v422_v22, 4  ;;  %v2045_v32 = vcombine.low %v1976_v43, %v1982_v48  ;;  %v431_v34 = vshll.u32 %v2019_v6, 16 }
  0x3f   : > { %v427_v33 = vrot.slane %v425_v26, 5  ;;  %v437_v36 = vrot.slane %v435_v27, 4  ;;  %v2051_v38 = vcombine.low %v510_v14, %v513_v58  ;;  %v2053_v39 = vcombine.low %v496_v19, %v499_v24  ;;  %v2086_v58 = vld [vmem:[%s1773_s28 + $0x6c] sm:$0xf] }
  0x40   : > { %711 = vrot.lane.b32.xlu1 %v1994_v55, %s1697_s6  ;;  %688 = vrot.lane.b32.xlu0 %v1855_v56, %s1699_s10  ;;  %v516_v41 = vrot.slane %v1982_v48, 5  ;;  %v441_v42 = vshll.u32 %v2040_v11, 16  ;;  %v405_v46 = vrot.slane %v404_v25, 4  ;;  %v419_v47 = vrot.slane %v417_v1, 5 }
  0x41   : > { %v428_v50 = vor.u32 %v427_v33, %v424_v31  ;;  %v433_v51 = vrot.slane %v431_v34, 5  ;;  %v415_v53 = vrot.slane %v414_v16, 4  ;;  %v1437_v54 = vrot.slane %v1976_v43, 9 }
  0x42   : > { %v529_v48 = vshrl.u32 %v2049_v37, 16  ;;  %v532_v59 = vshll.u32 %v2049_v37, 16  ;;  %v519_v60 = vrot.slane %v2004_v5, 5  ;;  %v443_v63 = vrot.slane %v441_v42, 5 }
  0x43   : > { %v429_v61 = vrot.slane %v428_v50, 4  ;;  %v438_v62 = vor.u32 %v437_v36, %v433_v51  ;;  %v518_v2 = vrot.slane %v516_v41, 4  ;;  %v542_v3 = vshrl.u32 %v2062_v52, 16 }
  0x44   : > { %730 = vrot.lane.b32.xlu1 %v2025_v15, %s1701_s23  ;;  %707 = vrot.lane.b32.xlu0 %v1959_v29, %s1697_s6  ;;  %v531_v4 = vrot.slane %v529_v48, 4  ;;  %v534_v8 = vrot.slane %v532_v59, 5  ;;  %v410_v43 = vsel %vm1838_vm5, %v405_v46, %v2016_v7  ;;  %v538_v57 = vshll.u32 %v2062_v52, 16  ;;  %v2091_v7 = vld [vmem:[%s1773_s28 + $0x70] sm:$0xf] }
  0x45   : > { %v434_v5 = vsel %vm1838_vm5, %v429_v61, %v433_v51  ;;  %v439_v18 = vrot.slane %v438_v62, 4  ;;  %v420_v10 = vsel %vm1838_vm5, %v415_v53, %v419_v47  ;;  %v544_v30 = vrot.slane %v542_v3, 4 }
  0x46   : > { %v535_v12 = vor.u32 %v534_v8, %v531_v4  ;;  %v548_v14 = vshll.u32 %v2069_v0, 16  ;;  %v540_v1 = vrot.slane %v538_v57, 5  ;;  %v2095_v22 = vcombine.low %v1898_v35, %v1907_v40 }
  0x47   : > { %v444_v19 = vsel %vm1838_vm5, %v439_v18, %v443_v63  ;;  %v517_v24 = vsel %vm1811_vm4, %v1437_v54, %v516_v41  ;;  %v1455_v27 = vcombine.low %v410_v43, %v420_v10  ;;  %v563_v33 = vshrl.u32 %v2086_v58, 16  ;;  %v2113_v41 = vld [vmem:[%s1773_s28 + $0x74] sm:$0x1]  ;;  %s1423_s28 = sshll.u32 %s1678_s12, 4  ;;  %s2386_s12 = smov (!%p209_p7, %s1678_s12), 1 }
  0x48   : > { %749 = vrot.lane.b32.xlu1 %v2051_v38, %s1700_s20  ;;  %726 = vrot.lane.b32.xlu0 %v1955_v28, %s1701_s23  ;;  %v2099_v25 = vcombine.low %v434_v5, %v444_v19  ;;  %v536_v26 = vrot.slane %v535_v12, 4  ;;  %v545_v16 = vor.u32 %v544_v30, %v540_v1  ;;  %v550_v31 = vrot.slane %v548_v14, 5  ;;  %p200_p6 = scmp.lt.s32.totalorder %s1423_s28, 31 }
  0x49   : > { %v520_v35 = vsel %vm1811_vm4, %v518_v2, %v519_v60  ;;  %v566_v34 = vshll.u32 %v2086_v58, 16  ;;  %v576_v36 = vshrl.u32 %v2091_v7, 16  ;;  %v565_v46 = vrot.slane %v563_v33, 4 }
  0x4a   : > { %v541_v40 = vsel %vm1838_vm5, %v536_v26, %v540_v1  ;;  %v546_v42 = vrot.slane %v545_v16, 4  ;;  %v572_v50 = vshll.u32 %v2091_v7, 16  ;;  %v1463_v51 = vcombine.low %v517_v24, %v520_v35  ;;  %s2384_s28 = smov (!%p200_p6, %s1423_s28), 31 }
  0x4b   : > { %v568_v47 = vrot.slane %v566_v34, 5  ;;  %v578_v54 = vrot.slane %v576_v36, 4  ;;  %v582_v48 = vshll.u32 %v2113_v41, 16  ;;  %v1441_v62 = vcombine.low %v1797_v17, %v1806_v21  ;;  %s203_s5 = sadd.s32 %s1424_s4, %s2384_s28 }
  0x4c   : > { %768 = vrot.lane.b32.xlu1 %v2045_v32, %s1698_s7  ;;  %745 = vrot.lane.b32.xlu0 %v2053_v39, %s1700_s20  ;;  %v551_v53 = vsel %vm1838_vm5, %v546_v42, %v550_v31  ;;  %v574_v61 = vrot.slane %v572_v50, 5  ;;  %v2151_v45 = vcombine.low %v2014_v13, %v2019_v6  ;;  %v526_v18 = vrot.slane %v2040_v11, 5 }
  0x4d   : > { %v1466_v59 = vcombine.low %v541_v40, %v551_v53  ;;  %v569_v60 = vor.u32 %v568_v47, %v565_v46  ;;  %v584_v3 = vrot.slane %v582_v48, 5  ;;  %1484 = vmatprep.mubr.msk.bf16.mxu1 %vm798_vm6, %v1463_v51  ;;  %v1465_v57 = vcombine.low %v2049_v37, %v2062_v52 }
  0x4e   : > { %v579_v2 = vor.u32 %v578_v54, %v574_v61  ;;  %v557_v10 = vrot.slane %v2062_v52, 5  ;;  %v591_v11 = vrot.slane %v2091_v7, 5  ;;  %v1439_v12 = vrot.slane %v2049_v37, 9 }
  0x4f   : > { %v570_v63 = vrot.slane %v569_v60, 4  ;;  %v560_v14 = vrot.slane %v2069_v0, 5  ;;  %v1440_v19 = vrot.slane %v2086_v58, 9  ;;  %v594_v1 = vrot.slane %v2113_v41, 5 }
  0x50   : > { %787 = vrot.lane.b32.xlu1 %v1455_v27, %s1703_s30  ;;  %764 = vrot.lane.b32.xlu0 %v2095_v22, %s1698_s7  ;;  %v580_v8 = vrot.slane %v579_v2, 4  ;;  %v559_v30 = vrot.slane %v557_v10, 4  ;;  %v593_v52 = vrot.slane %v591_v11, 4  ;;  %v558_v24 = vsel %vm1811_vm4, %v1439_v12, %v557_v10 }
  0x51   : > { %v575_v4 = vsel %vm1838_vm5, %v570_v63, %v574_v61  ;;  %v2197_v0 = vsel %vm1811_vm4, %v1440_v19, %v591_v11  ;;  %v1468_v23 = vcombine.low %v2086_v58, %v2091_v7 }
  0x52   : > { %v585_v43 = vsel %vm1838_vm5, %v580_v8, %v584_v3  ;;  %v561_v37 = vsel %vm1811_vm4, %v559_v30, %v560_v14  ;;  %v2201_v26 = vsel %vm1811_vm4, %v593_v52, %v594_v1 }
  0x53   : > { %v1469_v56 = vcombine.low %v575_v4, %v585_v43 }
  0x54   : > { %654 = vrot.lane.b32.xlu1 %v2025_v15, %s1702_s26  ;;  %783 = vrot.lane.b32.xlu0 %v1978_v44, %s1703_s30 }
  0x58   : > { %694 = vrot.lane.b32.xlu1 %v2051_v38, %s1699_s10  ;;  %650 = vrot.lane.b32.xlu0 %v1955_v28, %s1702_s26  ;;  %v523_v28 = vrot.slane %v2019_v6, 5 }
  0x5a   : > { %v525_v5 = vrot.slane %v523_v28, 4 }
  0x5c   : > { %713 = vrot.lane.b32.xlu1 %v2045_v32, %s1697_s6  ;;  %690 = vrot.lane.b32.xlu0 %v2053_v39, %s1699_s10 }
  0x60   : > { %732 = vrot.lane.b32.xlu1 %v1455_v27, %s1701_s23  ;;  %709 = vrot.lane.b32.xlu0 %v2095_v22, %s1697_s6 }
  0x64   : > { %751 = vrot.lane.b32.xlu1 %v1463_v51, %s1700_s20  ;;  %728 = vrot.lane.b32.xlu0 %v1978_v44, %s1701_s23  ;;  %v1438_v44 = vrot.slane %v2014_v13, 9 }
  0x66   : > { %v524_v6 = vsel %vm1811_vm4, %v1438_v44, %v523_v28 }
  0x68   : > { %770 = vrot.lane.b32.xlu1 %v2151_v45, %s1698_s7  ;;  %747 = vrot.lane.b32.xlu0 %v1984_v49, %s1700_s20 }
  0x6c   : > { %789 = vrot.lane.b32.xlu1 %v2099_v25, %s1703_s30  ;;  %766 = vrot.lane.b32.xlu0 %v1994_v55, %s1698_s7 }
  0x70   : > { %785 = vrot.lane.b32.xlu0 %v2025_v15, %s1703_s30  ;;  %696 = vrot.lane.b32.xlu1 %v1463_v51, %s1699_s10  ;;  %v527_v15 = vsel %vm1811_vm4, %v525_v5, %v526_v18 }
  0x71   : > { %v2179_v13 = vcombine.low %v524_v6, %v527_v15 }
  0x74   : > { %656 = vrot.lane.b32.xlu0 %v1455_v27, %s1702_s26  ;;  %734 = vrot.lane.b32.xlu1 %v2099_v25, %s1701_s23  ;;  %v1470_v27 = vcombine.low %v2197_v0, %v2201_v26 }
  0x78   : > { %715 = vrot.lane.b32.xlu0 %v2151_v45, %s1697_s6  ;;  %772 = vrot.lane.b32.xlu1 %v1465_v57, %s1698_s7 }
  0x7c   : > { %753 = vrot.lane.b32.xlu0 %v2179_v13, %s1700_s20  ;;  %658 = vrot.lane.b32.xlu1 %v2099_v25, %s1702_s26  ;;  %v2207_v25 = vcombine.low %v558_v24, %v561_v37 }
  0x80   : > { %791 = vrot.lane.b32.xlu0 %v1466_v59, %s1703_s30  ;;  %717 = vrot.lane.b32.xlu1 %v1465_v57, %s1697_s6  ;;  %s1425_s6 = sshll.u32 %s203_s5, 2 }
  0x81   : > { %s2305_s9 = scalar_lea.vmem %s2365_s2, %s1425_s6 }
  0x84   : > { %698 = vrot.lane.b32.xlu0 %v2179_v13, %s1699_s10  ;;  %755 = vrot.lane.b32.xlu1 %v2207_v25, %s1700_s20  ;;  %s1426_s10 = sshll.u32 %s2382_s13, 1 }
  0x85   : > { %s212_s11 = sadd.s32 %s1426_s10, %s2386_s12 }
  0x86   : > { %s1427_s19 = sshll.u32 %s212_s11, 1 }
  0x87   : > { %s214_s22 = scalar_lea.vmem %s2366_s3, %s1427_s19 }
  0x88   : > { %736 = vrot.lane.b32.xlu0 %v1466_v59, %s1701_s23  ;;  %793 = vrot.lane.b32.xlu1 %v1469_v56, %s1703_s30 }
  0x8a   : > { %v704_v16 = vpop.permute.xlu1 %703 }
  0x8c   : > { %774 = vrot.lane.b32.xlu0 %v1468_v23, %s1698_s7 }
  0x8e   : > { %v761_v31 = vpop.permute.xlu1 %760 }
  0x92   : > { %v685_v33 = vpop.permute.xlu0 %684  ;;  %v706_v35 = vpop.permute.xlu1 %705 }
  0x96   : > { %v742_v40 = vpop.permute.xlu0 %741  ;;  %v744_v34 = vpop.permute.xlu1 %743 }
  0x9a   : > { %v687_v36 = vpop.permute.xlu0 %686  ;;  %v723_v41 = vpop.permute.xlu1 %722 }
  0x9e   : > { %v645_v42 = vpop.permute.xlu0 %644  ;;  %v647_v46 = vpop.permute.xlu1 %646 }
  0x9f   : > { %v801_v58 = vsel %vm798_vm6, %v1441_v62, %v645_v42  ;;  %v804_v47 = vsel %vm798_vm6, %v1785_v9, %v647_v46 }
  0xa0   : > { %v825_v7 = vsel %vm823_vm7, %v801_v58, %v685_v33  ;;  %v827_v54 = vsel %vm823_vm7, %v804_v47, %v687_v36 }
  0xa1   : > { %v842_v50 = vsel %vm840_vm8, %v825_v7, %v704_v16  ;;  %v844_v9 = vsel %vm840_vm8, %v827_v54, %v706_v35 }
  0xa2   : > { %v780_v51 = vpop.permute.xlu0 %779  ;;  %v859_v53 = vsel %vm857_vm9, %v842_v50, %v723_v41 }
  0xa3   : > { %v876_v17 = vsel %vm874_vm10, %v859_v53, %v742_v40 }
  0xa4   : > { %v893_v21 = vsel %vm891_vm11, %v876_v17, %v761_v31 }
  0xa5   : > { %v910_v48 = vsel %vm908_vm12, %v893_v21, %v780_v51 }
  0xa6   : > { %v782_v59 = vpop.permute.xlu1 %781  ;;  %1062 = vmatmul.mubr.bf16.vlgmr.msra.gmra.mrb[0].mxu0 %v910_v48  ;;  %v725_v60 = vpop.permute.xlu0 %724 }
  0xa7   : > { %v861_v61 = vsel %vm857_vm9, %v844_v9, %v725_v60  ;;  %1481 = vmatprep.mubr.msk.bf16.mxu0 %vm798_vm6, %v2053_v39 }
  0xa8   : > { %v878_v63 = vsel %vm874_vm10, %v861_v61, %v744_v34 }
  0xaa   : > { %v653_v62 = vpop.permute.xlu1 %652  ;;  %v763_v2 = vpop.permute.xlu0 %762 }
  0xab   : > { %v895_v3 = vsel %vm891_vm11, %v878_v63, %v763_v2  ;;  %v813_v39 = vsel %vm798_vm6, %v2095_v22, %v653_v62 }
  0xac   : > { %v913_v4 = vsel %vm908_vm12, %v895_v3, %v782_v59 }
  0xae   : > { %v693_v8 = vpop.permute.xlu1 %692  ;;  %1070 = vmatmul.mubr.bf16.gmra.mrb[4].mxu0 %v913_v4  ;;  %v649_v43 = vpop.permute.xlu0 %648 }
  0xaf   : > { %1482 = vmatprep.mubr.msk.bf16.mxu0 %vm798_vm6, %v1984_v49  ;;  %v833_v6 = vsel %vm823_vm7, %v813_v39, %v693_v8  ;;  %v807_v49 = vsel %vm798_vm6, %v1803_v20, %v649_v43 }
  0xb2   : > { %v712_v56 = vpop.permute.xlu1 %711  ;;  %v689_v28 = vpop.permute.xlu0 %688 }
  0xb3   : > { %v850_v11 = vsel %vm840_vm8, %v833_v6, %v712_v56  ;;  %v829_v14 = vsel %vm823_vm7, %v807_v49, %v689_v28 }
  0xb6   : > { %v731_v44 = vpop.permute.xlu1 %730  ;;  %v708_v5 = vpop.permute.xlu0 %707 }
  0xb7   : > { %v867_v12 = vsel %vm857_vm9, %v850_v11, %v731_v44  ;;  %v846_v52 = vsel %vm840_vm8, %v829_v14, %v708_v5 }
  0xba   : > { %v750_v18 = vpop.permute.xlu1 %749  ;;  %v727_v57 = vpop.permute.xlu0 %726 }
  0xbb   : > { %v884_v30 = vsel %vm874_vm10, %v867_v12, %v750_v18  ;;  %v863_v37 = vsel %vm857_vm9, %v846_v52, %v727_v57 }
  0xbe   : > { %v769_v15 = vpop.permute.xlu1 %768  ;;  %v746_v10 = vpop.permute.xlu0 %745 }
  0xbf   : > { %v901_v19 = vsel %vm891_vm11, %v884_v30, %v769_v15  ;;  %v880_v23 = vsel %vm874_vm10, %v863_v37, %v746_v10 }
  0xc2   : > { %v788_v22 = vpop.permute.xlu1 %787  ;;  %v765_v1 = vpop.permute.xlu0 %764 }
  0xc3   : > { %v922_v24 = vsel %vm908_vm12, %v901_v19, %v788_v22  ;;  %v897_v20 = vsel %vm891_vm11, %v880_v23, %v765_v1 }
  0xc4   : > { %1094 = vmatmul.mubr.bf16.vlgmr.msra.gmra.mrb[0].mxu1 %v922_v24 }
  0xc5   : > { %1485 = vmatprep.mubr.msk.bf16.mxu1 %vm798_vm6, %v2179_v13 }
  0xc6   : > { %v655_v16 = vpop.permute.xlu1 %654  ;;  %v784_v31 = vpop.permute.xlu0 %783 }
  0xc7   : > { %v916_v33 = vsel %vm908_vm12, %v897_v20, %v784_v31  ;;  %v816_v46 = vsel %vm798_vm6, %v1994_v55, %v655_v16 }
  0xc8   : > { %1078 = vmatmul.mubr.bf16.gmra.mrb[8].mxu0 %v916_v33 }
  0xc9   : > { %1483 = vmatprep.mubr.msk.bf16.mxu0 %vm798_vm6, %v2051_v38 }
  0xca   : > { %v695_v35 = vpop.permute.xlu1 %694  ;;  %v651_v40 = vpop.permute.xlu0 %650 }
  0xcb   : > { %v835_v7 = vsel %vm823_vm7, %v816_v46, %v695_v35  ;;  %v810_v38 = vsel %vm798_vm6, %v1959_v29, %v651_v40 }
  0xce   : > { %v714_v34 = vpop.permute.xlu1 %713  ;;  %v691_v36 = vpop.permute.xlu0 %690 }
  0xcf   : > { %v852_v51 = vsel %vm840_vm8, %v835_v7, %v714_v34  ;;  %v831_v17 = vsel %vm823_vm7, %v810_v38, %v691_v36 }
  0xd2   : > { %v733_v41 = vpop.permute.xlu1 %732  ;;  %v710_v42 = vpop.permute.xlu0 %709 }
  0xd3   : > { %v869_v53 = vsel %vm857_vm9, %v852_v51, %v733_v41  ;;  %v848_v59 = vsel %vm840_vm8, %v831_v17, %v710_v42 }
  0xd6   : > { %v752_v13 = vpop.permute.xlu1 %751  ;;  %v729_v58 = vpop.permute.xlu0 %728 }
  0xd7   : > { %v886_v54 = vsel %vm874_vm10, %v869_v53, %v752_v13  ;;  %v865_v60 = vsel %vm857_vm9, %v848_v59, %v729_v58 }
  0xda   : > { %v771_v47 = vpop.permute.xlu1 %770  ;;  %v748_v50 = vpop.permute.xlu0 %747 }
  0xdb   : > { %v903_v21 = vsel %vm891_vm11, %v886_v54, %v771_v47  ;;  %v882_v61 = vsel %vm874_vm10, %v865_v60, %v748_v50 }
  0xde   : > { %v790_v55 = vpop.permute.xlu1 %789  ;;  %v767_v48 = vpop.permute.xlu0 %766 }
  0xdf   : > { %v925_v9 = vsel %vm908_vm12, %v903_v21, %v790_v55  ;;  %v899_v29 = vsel %vm891_vm11, %v882_v61, %v767_v48 }
  0xe0   : > { %1102 = vmatmul.mubr.bf16.gmra.mrb[4].mxu1 %v925_v9 }
  0xe1   : > { %1486 = vmatprep.mubr.msk.bf16.mxu1 %vm798_vm6, %v2207_v25 }
  0xe2   : > { %v786_v62 = vpop.permute.xlu0 %785  ;;  %v697_v63 = vpop.permute.xlu1 %696 }
  0xe3   : > { %v919_v2 = vsel %vm908_vm12, %v899_v29, %v786_v62 }
  0xe4   : > { %1086 = vmatmul.mubr.bf16.gmra.mrb[12].mxu0 %v919_v2 }
  0xe6   : > { %v657_v3 = vpop.permute.xlu0 %656  ;;  %v735_v4 = vpop.permute.xlu1 %734 }
  0xe7   : > { %v819_v8 = vsel %vm798_vm6, %v2045_v32, %v657_v3 }
  0xe8   : > { %v837_v43 = vsel %vm823_vm7, %v819_v8, %v697_v63 }
  0xea   : > { %v716_v56 = vpop.permute.xlu0 %715  ;;  %v773_v28 = vpop.permute.xlu1 %772 }
  0xeb   : > { %v854_v44 = vsel %vm840_vm8, %v837_v43, %v716_v56 }
  0xec   : > { %v871_v25 = vsel %vm857_vm9, %v854_v44, %v735_v4 }
  0xee   : > { %v754_v5 = vpop.permute.xlu0 %753  ;;  %v659_v39 = vpop.permute.xlu1 %658 }
  0xef   : > { %v888_v18 = vsel %vm874_vm10, %v871_v25, %v754_v5  ;;  %v822_v32 = vsel %vm798_vm6, %v2151_v45, %v659_v39 }
  0xf0   : > { %v905_v57 = vsel %vm891_vm11, %v888_v18, %v773_v28 }
  0xf2   : > { %v792_v6 = vpop.permute.xlu0 %791  ;;  %v718_v15 = vpop.permute.xlu1 %717 }
  0xf3   : > { %v928_v10 = vsel %vm908_vm12, %v905_v57, %v792_v6 }
  0xf4   : > { %1110 = vmatmul.mubr.bf16.gmra.mrb[8].mxu1 %v928_v10 }
  0xf5   : > { %1487 = vmatprep.mubr.msk.bf16.mxu1 %vm798_vm6, %v1470_v27 }
  0xf6   : > { %v699_v11 = vpop.permute.xlu0 %698  ;;  %v756_v49 = vpop.permute.xlu1 %755 }
  0xf7   : > { %v839_v12 = vsel %vm823_vm7, %v822_v32, %v699_v11 }
  0xf8   : > { %v856_v30 = vsel %vm840_vm8, %v839_v12, %v718_v15 }
  0xfa   : > { %v737_v14 = vpop.permute.xlu0 %736  ;;  %v794_v22 = vpop.permute.xlu1 %793 }
  0xfb   : > { %v873_v19 = vsel %vm857_vm9, %v856_v30, %v737_v14 }
  0xfc   : > { %v890_v1 = vsel %vm874_vm10, %v873_v19, %v756_v49 }
  0xfe   : > { %v775_v52 = vpop.permute.xlu0 %774 }
  0xff   : > { %v907_v0 = vsel %vm891_vm11, %v890_v1, %v775_v52 }
 0x100   : > { %v931_v26 = vsel %vm908_vm12, %v907_v0, %v794_v22 }
 0x101   : > { %1118 = vmatmul.mubr.bf16.gmra.mrb[12].mxu1 %v931_v26 }
 0x179   : > { %v2300_v45 = vpop.f32.mrb[0].mxu0 }
 0x17a   : > { %v1065_v27 = vpop.f32.mrb[1].mxu0 }
 0x17b   : > { %v2307_v24 = vpop.f32.mrb[2].mxu0 }
 0x17c   : > { %v1526_v37 = vpack.c.bf16 %v2307_v24, %v2300_v45  ;;  %v1206_v23 = vadd.f32 %v2307_v24, %v2300_v45  ;;  %v1068_v20 = vpop.f32.mrb[3].mxu0 }
 0x17e   : > { %1527 = vst [vmem:[%s2305_s9] sm:$0xff] %v1526_v37  }
 0x181   : > { %v2314_v16 = vpop.f32.mrb[4].mxu0 }
 0x182   : > { %v1207_v31 = vadd.f32 %v1206_v23, %v2314_v16  ;;  %v1073_v33 = vpop.f32.mrb[5].mxu0 }
 0x183   : > { %v2317_v35 = vpop.f32.mrb[6].mxu0 }
 0x184   : > { %v1531_v40 = vpack.c.bf16 %v2317_v35, %v2314_v16  ;;  %v1208_v34 = vadd.f32 %v1207_v31, %v2317_v35  ;;  %v1076_v36 = vpop.f32.mrb[7].mxu0 }
 0x186   : > { %1563 = vst [vmem:[%s2305_s9 + $0x8] sm:$0xff] %v1531_v40  }
 0x197   : > { %v2323_v41 = vpop.f32.mrb[0].mxu1 }
 0x198   : > { %v1097_v42 = vpop.f32.mrb[1].mxu1 }
 0x199   : > { %v1098_v46 = vpop.f32.mrb[2].mxu1 }
 0x19a   : > { %v1546_v13 = vpack.c.bf16 %v1098_v46, %v2323_v41  ;;  %v1100_v58 = vpop.f32.mrb[3].mxu1 }
 0x19b   : > { %v1079_v7 = vpop.f32.mrb[8].mxu0 }
 0x19c   : > { %1566 = vst [vmem:[%s2305_s9 + $0x20] sm:$0xff] %v1546_v13   ;;  %v1209_v47 = vadd.f32 %v1208_v34, %v1079_v7  ;;  %v1081_v50 = vpop.f32.mrb[9].mxu0 }
 0x19d   : > { %v1082_v51 = vpop.f32.mrb[10].mxu0 }
 0x19e   : > { %v1536_v53 = vpack.c.bf16 %v1082_v51, %v1079_v7  ;;  %v1210_v38 = vadd.f32 %v1209_v47, %v1082_v51  ;;  %v1084_v54 = vpop.f32.mrb[11].mxu0 }
 0x1a0   : > { %1564 = vst [vmem:[%s2305_s9 + $0x10] sm:$0xff] %v1536_v53  }
 0x1b3   : > { %v1103_v17 = vpop.f32.mrb[4].mxu1 }
 0x1b4   : > { %v1105_v21 = vpop.f32.mrb[5].mxu1 }
 0x1b5   : > { %v1106_v55 = vpop.f32.mrb[6].mxu1 }
 0x1b6   : > { %v1551_v48 = vpack.c.bf16 %v1106_v55, %v1103_v17  ;;  %v1108_v59 = vpop.f32.mrb[7].mxu1 }
 0x1b7   : > { %v1087_v9 = vpop.f32.mrb[12].mxu0 }
 0x1b8   : > { %1567 = vst [vmem:[%s2305_s9 + $0x28] sm:$0xff] %v1551_v48   ;;  %v1211_v60 = vadd.f32 %v1210_v38, %v1087_v9  ;;  %v1089_v61 = vpop.f32.mrb[13].mxu0 }
 0x1b9   : > { %v1090_v29 = vpop.f32.mrb[14].mxu0 }
 0x1ba   : > { %v1541_v62 = vpack.c.bf16 %v1090_v29, %v1087_v9  ;;  %v1212_v63 = vadd.f32 %v1211_v60, %v1090_v29  ;;  %v1092_v2 = vpop.f32.mrb[15].mxu0 }
 0x1bc   : > { %1565 = vst [vmem:[%s2305_s9 + $0x18] sm:$0xff] %v1541_v62   ;;  %v1213_v3 = vadd.f32 %v1212_v63, %v2323_v41 }
 0x1be   : > { %v1214_v4 = vadd.f32 %v1213_v3, %v1098_v46 }
 0x1c0   : > { %v1215_v8 = vadd.f32 %v1214_v4, %v1103_v17 }
 0x1c2   : > { %v1216_v43 = vadd.f32 %v1215_v8, %v1106_v55 }
 0x1c7   : > { %v1111_v56 = vpop.f32.mrb[8].mxu1 }
 0x1c8   : > { %v1217_v28 = vadd.f32 %v1216_v43, %v1111_v56  ;;  %v1113_v44 = vpop.f32.mrb[9].mxu1 }
 0x1c9   : > { %v1114_v25 = vpop.f32.mrb[10].mxu1 }
 0x1ca   : > { %v1556_v5 = vpack.c.bf16 %v1114_v25, %v1111_v56  ;;  %v1218_v39 = vadd.f32 %v1217_v28, %v1114_v25  ;;  %v1116_v18 = vpop.f32.mrb[11].mxu1 }
 0x1cc   : > { %1568 = vst [vmem:[%s2305_s9 + $0x30] sm:$0xff] %v1556_v5  }
 0x1d4   : > { %v1119_v57 = vpop.f32.mrb[12].mxu1 }
 0x1d5   : > { %v1219_v6 = vadd.f32 %v1218_v39, %v1119_v57  ;;  %v1121_v15 = vpop.f32.mrb[13].mxu1 }
 0x1d6   : > { %v1122_v10 = vpop.f32.mrb[14].mxu1 }
 0x1d7   : > { %v1561_v32 = vpack.c.bf16 %v1122_v10, %v1119_v57  ;;  %v1220_v11 = vadd.f32 %v1219_v6, %v1122_v10  ;;  %v1124_v12 = vpop.f32.mrb[15].mxu1 }
 0x1d9   : > { %1569 = vst [vmem:[%s2305_s9 + $0x38] sm:$0xff] %v1561_v32   ;;  %v1221_v49 = vrot.slane %v1220_v11, 4 }
 0x1db   : > { %v1222_v30 = vadd.f32 %v1221_v49, %v1220_v11 }
 0x1dd   : > { %v1223_v14 = vrot.slane %v1222_v30, 2 }
 0x1df   : > { %v1224_v19 = vadd.f32 %v1223_v14, %v1222_v30 }
 0x1e1   : > { %v1225_v22 = vrot.slane %v1224_v19, 1 }
 0x1e3   : > { %v2333_v1 = vadd.f32 %v1225_v22, %v1224_v19 }
 0x1e5   : > { %v1227_v52 = vmul.f32 0.0078125, %v2333_v1 }
 0x1e7   : > { %v1228_v0 = vsub.f32 %v2300_v45, %v1227_v52  ;;  %v1229_v26 = vsub.f32 %v2307_v24, %v1227_v52  ;;  %v1230_v27 = vsub.f32 %v2314_v16, %v1227_v52  ;;  %v1231_v37 = vsub.f32 %v2317_v35, %v1227_v52 }
 0x1e8   : > { %v1232_v23 = vsub.f32 %v1079_v7, %v1227_v52  ;;  %v1233_v20 = vsub.f32 %v1082_v51, %v1227_v52  ;;  %v1234_v31 = vsub.f32 %v1087_v9, %v1227_v52  ;;  %v1235_v33 = vsub.f32 %v1090_v29, %v1227_v52 }
 0x1e9   : > { %v1236_v40 = vsub.f32 %v2323_v41, %v1227_v52  ;;  %v1237_v34 = vsub.f32 %v1098_v46, %v1227_v52  ;;  %v1238_v36 = vsub.f32 %v1103_v17, %v1227_v52  ;;  %v1239_v42 = vsub.f32 %v1106_v55, %v1227_v52 }
 0x1ea   : > { %v1240_v13 = vsub.f32 %v1111_v56, %v1227_v52  ;;  %v1241_v58 = vsub.f32 %v1114_v25, %v1227_v52  ;;  %v1242_v47 = vsub.f32 %v1119_v57, %v1227_v52  ;;  %v1243_v50 = vsub.f32 %v1122_v10, %v1227_v52 }
 0x1eb   : > { %v1244_v45 = vmul.f32 %v1228_v0, %v1228_v0  ;;  %v1245_v53 = vmul.f32 %v1229_v26, %v1229_v26  ;;  %v1246_v24 = vmul.f32 %v1230_v27, %v1230_v27  ;;  %v1247_v16 = vmul.f32 %v1231_v37, %v1231_v37 }
 0x1ec   : > { %v1248_v35 = vmul.f32 %v1232_v23, %v1232_v23  ;;  %v1249_v51 = vmul.f32 %v1233_v20, %v1233_v20  ;;  %v1250_v48 = vmul.f32 %v1234_v31, %v1234_v31  ;;  %v1251_v41 = vmul.f32 %v1235_v33, %v1235_v33 }
 0x1ed   : > { %v1260_v38 = vadd.f32 %v1245_v53, %v1244_v45  ;;  %v1252_v17 = vmul.f32 %v1236_v40, %v1236_v40  ;;  %v1253_v9 = vmul.f32 %v1237_v34, %v1237_v34  ;;  %v1254_v61 = vmul.f32 %v1238_v36, %v1238_v36 }
 0x1ee   : > { %v1255_v62 = vmul.f32 %v1239_v42, %v1239_v42  ;;  %v1256_v2 = vmul.f32 %v1240_v13, %v1240_v13  ;;  %v1257_v4 = vmul.f32 %v1241_v58, %v1241_v58  ;;  %v1258_v43 = vmul.f32 %v1242_v47, %v1242_v47 }
 0x1ef   : > { %v1261_v54 = vadd.f32 %v1260_v38, %v1246_v24  ;;  %v1259_v28 = vmul.f32 %v1243_v50, %v1243_v50 }
 0x1f1   : > { %v1262_v7 = vadd.f32 %v1261_v54, %v1247_v16 }
 0x1f3   : > { %v1263_v21 = vadd.f32 %v1262_v7, %v1248_v35 }
 0x1f5   : > { %v1264_v59 = vadd.f32 %v1263_v21, %v1249_v51 }
 0x1f7   : > { %v1265_v46 = vadd.f32 %v1264_v59, %v1250_v48 }
 0x1f9   : > { %v1266_v55 = vadd.f32 %v1265_v46, %v1251_v41 }
 0x1fb   : > { %v1267_v60 = vadd.f32 %v1266_v55, %v1252_v17 }
 0x1fd   : > { %v1268_v29 = vadd.f32 %v1267_v60, %v1253_v9 }
 0x1ff   : > { %v1269_v63 = vadd.f32 %v1268_v29, %v1254_v61 }
 0x201   : > { %v1270_v3 = vadd.f32 %v1269_v63, %v1255_v62 }
 0x203   : > { %v1271_v8 = vadd.f32 %v1270_v3, %v1256_v2 }
 0x205   : > { %v1272_v56 = vadd.f32 %v1271_v8, %v1257_v4 }
 0x207   : > { %v1273_v44 = vadd.f32 %v1272_v56, %v1258_v43 }
 0x209   : > { %v1274_v25 = vadd.f32 %v1273_v44, %v1259_v28 }
 0x20b   : > { %v1275_v5 = vrot.slane %v1274_v25, 4 }
 0x20d   : > { %v1276_v39 = vadd.f32 %v1275_v5, %v1274_v25 }
 0x20f   : > { %v1277_v18 = vrot.slane %v1276_v39, 2 }
 0x211   : > { %v1278_v57 = vadd.f32 %v1277_v18, %v1276_v39 }
 0x213   : > { %v1279_v6 = vrot.slane %v1278_v57, 1 }
 0x215   : > { %v1280_v15 = vadd.f32 %v1279_v6, %v1278_v57 }
 0x217   : > { %v1282_v10 = vsel %vm1281_vm13, %v2333_v1, %v1280_v15 }
 0x218   : > { %1283 = vst [vmem:[%s214_s22] sm:$0x3] %v1282_v10 }
 0x219 PF: > { %s14_s16 = sadd.s32 1, %s1694_s16   ;;  %s2371_s12 = smov %s1686_s14 }
 0x21a   : > { %p11_p8 = scmp.ge.s32.totalorder %s14_s16, 6   ;;  %s2372_s13 = smov %s1690_s15 }
 0x21b   : > { %s2373_s14 = smov %s2376_s17  ;;  %s2374_s15 = smov %s2380_s18 }
 0x21c   :  { %13 = sbr.rel (!%p11_p8) target bundleno = 3 (0x3), region = 71 }

</bundles_post_ra>
